<compile_context>
chip_gen: v7x
topology: tpu7x:2x2x1
jax: 0.10.0
libtpu: 0.0.40
codegen_flags: <defaults>
</compile_context>

<pallas_src>
import functools

import jax
import jax.numpy as jnp
from jax import lax
from jax.experimental import pallas as pl
from jax.experimental.pallas import tpu as pltpu


def _msa_kernel(x_ref, wqkv_ref, wp_ref, b_ref, o_ref, qkvh_ref, ctxm_ref, *,
                num_heads, head_dim):
    H, hd = num_heads, head_dim
    N, C = x_ref.shape

    # 1) Fused QKV projection: one full-width MXU matmul (scale already folded
    #    into the q columns on the host), f32 accumulation.
    qkv = jnp.dot(x_ref[...], wqkv_ref[...],
                  preferred_element_type=jnp.float32)            # (N, 3C) f32

    # 2) Head split: stage static 16-lane slices into a (3H, N, hd) scratch so the
    #    attention contractions run as head-batched matmuls (no per-head matmul loop).
    for g in range(3 * H):
        qkvh_ref[g] = qkv[:, g * hd:(g + 1) * hd]
    qkvh = qkvh_ref[...]                                          # (3H, N, hd) f32
    q = qkvh[0:H].astype(jnp.bfloat16)                            # (H, N, hd) bf16
    k = qkvh[H:2 * H].astype(jnp.bfloat16)                        # (H, N, hd) bf16
    v = qkvh[2 * H:3 * H].astype(jnp.bfloat16)                    # (H, N, hd) bf16

    # 3) Scores for all heads of this batch element (bf16 operands, f32 acc).
    s = lax.dot_general(q, k, (((2,), (2,)), ((0,), (0,))),
                        preferred_element_type=jnp.float32)       # (H, N, N) f32

    # 4) Softmax over the HEADS axis (PyTorch attn.softmax(dim=1)); f32 epilogue.
    m = jnp.max(s, axis=0, keepdims=True)
    e = jnp.exp(s - m)
    denom = jnp.sum(e, axis=0, keepdims=True)
    attn = e * pl.reciprocal(denom, approx=True)                  # (H, N, N) f32

    # 5) Per-head context (bf16 operands, f32 acc).
    ctx = lax.dot_general(attn.astype(jnp.bfloat16), v,
                          (((2,), (1,)), ((0,), (0,))),
                          preferred_element_type=jnp.float32)     # (H, N, hd) f32

    # 6) Merge heads into a lane-dense (N, C) slab, then ONE output projection.
    for h in range(H):
        ctxm_ref[:, h * hd:(h + 1) * hd] = ctx[h]
    out = jnp.dot(ctxm_ref[...].astype(jnp.bfloat16), wp_ref[...],
                  preferred_element_type=jnp.float32) + b_ref[...]
    o_ref[...] = out.astype(o_ref.dtype)


def msa_forward(x, w_qkv, w_proj, b_proj, *, num_heads):
    """x: (B, N, C); w_qkv: (C, 3C) == qkv.weight.T; w_proj: (C, C) == proj.weight.T."""
    B, N, C = x.shape
    H = num_heads
    assert C % H == 0, "dim must be divisible by num_heads"
    hd = C // H
    scale = hd ** (-0.5)

    # ---- host-side parameter prep (cheap; precompute once in practice) ----
    w_qkv_s = jnp.concatenate([w_qkv[:, :C] * scale, w_qkv[:, C:]], axis=1)
    w_qkv_s = w_qkv_s.astype(jnp.bfloat16)          # (C, 3C), scale folded into q cols
    w_p = w_proj.astype(jnp.bfloat16)               # (C, C)
    bias = b_proj.reshape(1, C).astype(jnp.float32)
    x2 = x.reshape(B * N, C).astype(jnp.bfloat16)

    flops = 2 * B * N * C * 3 * C + 4 * B * H * N * N * hd + 2 * B * N * C * C
    bytes_accessed = (B * N * C * 2          # x (bf16)
                      + C * 3 * C * 2        # qkv weight (bf16)
                      + C * C * 2            # proj weight (bf16)
                      + C * 4                # bias (f32)
                      + B * N * C * 4)       # output (f32)

    kernel = functools.partial(_msa_kernel, num_heads=H, head_dim=hd)

    out2 = pl.pallas_call(
        kernel,
        out_shape=jax.ShapeDtypeStruct((B * N, C), jnp.float32),
        grid=(B,),
        in_specs=[
            pl.BlockSpec((N, C), lambda b: (b, 0)),        # rows of batch element b
            pl.BlockSpec((C, 3 * C), lambda b: (0, 0)),    # fused qkv weight (resident)
            pl.BlockSpec((C, C), lambda b: (0, 0)),        # proj weight (resident)
            pl.BlockSpec((1, C), lambda b: (0, 0)),        # proj bias
        ],
        out_specs=pl.BlockSpec((N, C), lambda b: (b, 0)),
        scratch_shapes=[
            pltpu.VMEM((3 * H, N, hd), jnp.float32),       # head-split staging
            pltpu.VMEM((N, C), jnp.float32),               # head-merge staging
        ],
        compiler_params=pltpu.CompilerParams(
            dimension_semantics=("parallel",),             # batch axis; megacore on v7x
        ),
        cost_estimate=pl.CostEstimate(
            flops=flops,
            transcendentals=B * H * N * N,
            bytes_accessed=bytes_accessed,
        ),
    )(x2, w_qkv_s, w_p, bias)

    return out2.reshape(B, N, C).astype(x.dtype)


def msa_reference(x, w_qkv, w_proj, b_proj, *, num_heads):
    """Pure-JAX (f32) reference mirroring the PyTorch forward exactly."""
    B, N, C = x.shape
    hd = C // num_heads
    scale = hd ** (-0.5)
    qkv = x @ w_qkv                                        # (B, N, 3C)
    qkv = qkv.reshape(B, N, 3, num_heads, hd).transpose(2, 0, 3, 1, 4)
    q, k, v = qkv[0], qkv[1], qkv[2]                       # (B, H, N, hd)
    attn = jnp.einsum("bhnd,bhmd->bhnm", q, k) * scale     # (B, H, N, N)
    attn = jax.nn.softmax(attn, axis=1)                    # softmax over heads (dim=1)
    out = jnp.einsum("bhnm,bhmd->bhnd", attn, v)           # (B, H, N, hd)
    out = out.transpose(0, 2, 1, 3).reshape(B, N, C)
    return out @ w_proj + b_proj.reshape(1, C)


if __name__ == "__main__":
    # Module defaults: dim=192, num_heads=12 -> head_dim=16
    B, N, C = 2, 8, 192
    num_heads = 12

    key = jax.random.PRNGKey(0)
    kx, kq, kp, kb = jax.random.split(key, 4)
    x = jax.random.normal(kx, (B, N, C), dtype=jnp.float32)
    # Deterministic synthetic parameters (no checkpoint loading).
    w_qkv = jax.random.normal(kq, (C, 3 * C), dtype=jnp.float32) * 0.02
    w_proj = jax.random.normal(kp, (C, C), dtype=jnp.float32) * 0.02
    b_proj = jax.random.normal(kb, (1, C), dtype=jnp.float32) * 0.02

    out = msa_forward(x, w_qkv, w_proj, b_proj, num_heads=num_heads)
    out = jax.block_until_ready(out)

    ref = msa_reference(x, w_qkv, w_proj, b_proj, num_heads=num_heads)
    assert out.shape == (B, N, C)
    # bf16 MXU operands (f32 accumulation) -> slightly looser tolerance than pure f32.
    assert jnp.allclose(out, ref, atol=2e-2, rtol=2e-2), "mismatch vs reference"

    print("KERNEL_OK")
</pallas_src>

<mosaic_0001>
module attributes {stable_mosaic.version = 11 : i64} {
  func.func @_msa_kernel(%arg0: i32, %arg1: memref<8x192xbf16, #tpu.memory_space<vmem>>, %arg2: memref<192x576xbf16, #tpu.memory_space<vmem>>, %arg3: memref<192x192xbf16, #tpu.memory_space<vmem>>, %arg4: memref<1x192xf32, #tpu.memory_space<vmem>>, %arg5: memref<8x192xf32, #tpu.memory_space<vmem>>, %arg6: memref<36x8x16xf32, #tpu.memory_space<vmem>>, %arg7: memref<8x192xf32, #tpu.memory_space<vmem>>) attributes {dimension_semantics = [#tpu.dimension_semantics<parallel>], iteration_bounds = array<i64: 2>, scalar_prefetch = 0 : i64, scratch_operands = 2 : i64, tpu.core_type = #tpu.core_type<tc>, window_params = [{transform_indices = @transform_0, window_bounds = array<i64: 8, 192>}, {pipeline_mode = #tpu.pipeline_mode<synchronous>, transform_indices = @transform_1, window_bounds = array<i64: 192, 576>}, {pipeline_mode = #tpu.pipeline_mode<synchronous>, transform_indices = @transform_2, window_bounds = array<i64: 192, 192>}, {pipeline_mode = #tpu.pipeline_mode<synchronous>, transform_indices = @transform_3, window_bounds = array<i64: 1, 192>}, {transform_indices = @transform_4, window_bounds = array<i64: 8, 192>}]} {
    %c0 = arith.constant 0 : index
    %c0_0 = arith.constant 0 : index
    %0 = vector.load %arg1[%c0, %c0_0] : memref<8x192xbf16, #tpu.memory_space<vmem>>, vector<8x192xbf16>
    %c0_1 = arith.constant 0 : index
    %c0_2 = arith.constant 0 : index
    %1 = vector.load %arg2[%c0_1, %c0_2] : memref<192x576xbf16, #tpu.memory_space<vmem>>, vector<192x576xbf16>
    %cst = arith.constant dense<0.000000e+00> : vector<8x576xf32>
    %2 = tpu.matmul %0, %1, %cst {dimension_numbers = #tpu.dot_dimension_numbers<[1], [0], [0], [1], [0, 0, 1, 1], [], []>} : vector<8x192xbf16>, vector<192x576xbf16>, vector<8x576xf32> -> vector<8x576xf32>
    %3 = vector.extract_strided_slice %2 {offsets = [0, 0], sizes = [8, 16], strides = [1, 1]} : vector<8x576xf32> to vector<8x16xf32>
    %c0_3 = arith.constant 0 : index
    %c0_4 = arith.constant 0 : index
    %c0_5 = arith.constant 0 : index
    %4 = vector.load %arg6[%c0_3, %c0_4, %c0_5] : memref<36x8x16xf32, #tpu.memory_space<vmem>>, vector<1x8x16xf32>
    %5 = vector.shape_cast %4 : vector<1x8x16xf32> to vector<8x16xf32>
    %6 = vector.shape_cast %3 : vector<8x16xf32> to vector<1x8x16xf32>
    tpu.vector_store %arg6[%c0_3, %c0_4, %c0_5], %6 {strides = array<i32>} : memref<36x8x16xf32, #tpu.memory_space<vmem>>, vector<1x8x16xf32>,
    %7 = vector.extract_strided_slice %2 {offsets = [0, 16], sizes = [8, 16], strides = [1, 1]} : vector<8x576xf32> to vector<8x16xf32>
    %c1 = arith.constant 1 : index
    %c0_6 = arith.constant 0 : index
    %c0_7 = arith.constant 0 : index
    %8 = vector.load %arg6[%c1, %c0_6, %c0_7] : memref<36x8x16xf32, #tpu.memory_space<vmem>>, vector<1x8x16xf32>
    %9 = vector.shape_cast %8 : vector<1x8x16xf32> to vector<8x16xf32>
    %10 = vector.shape_cast %7 : vector<8x16xf32> to vector<1x8x16xf32>
    tpu.vector_store %arg6[%c1, %c0_6, %c0_7], %10 {strides = array<i32>} : memref<36x8x16xf32, #tpu.memory_space<vmem>>, vector<1x8x16xf32>,
    %11 = vector.extract_strided_slice %2 {offsets = [0, 32], sizes = [8, 16], strides = [1, 1]} : vector<8x576xf32> to vector<8x16xf32>
    %c2 = arith.constant 2 : index
    %c0_8 = arith.constant 0 : index
    %c0_9 = arith.constant 0 : index
    %12 = vector.load %arg6[%c2, %c0_8, %c0_9] : memref<36x8x16xf32, #tpu.memory_space<vmem>>, vector<1x8x16xf32>
    %13 = vector.shape_cast %12 : vector<1x8x16xf32> to vector<8x16xf32>
    %14 = vector.shape_cast %11 : vector<8x16xf32> to vector<1x8x16xf32>
    tpu.vector_store %arg6[%c2, %c0_8, %c0_9], %14 {strides = array<i32>} : memref<36x8x16xf32, #tpu.memory_space<vmem>>, vector<1x8x16xf32>,
    %15 = vector.extract_strided_slice %2 {offsets = [0, 48], sizes = [8, 16], strides = [1, 1]} : vector<8x576xf32> to vector<8x16xf32>
    %c3 = arith.constant 3 : index
    %c0_10 = arith.constant 0 : index
    %c0_11 = arith.constant 0 : index
    %16 = vector.load %arg6[%c3, %c0_10, %c0_11] : memref<36x8x16xf32, #tpu.memory_space<vmem>>, vector<1x8x16xf32>
    %17 = vector.shape_cast %16 : vector<1x8x16xf32> to vector<8x16xf32>
    %18 = vector.shape_cast %15 : vector<8x16xf32> to vector<1x8x16xf32>
    tpu.vector_store %arg6[%c3, %c0_10, %c0_11], %18 {strides = array<i32>} : memref<36x8x16xf32, #tpu.memory_space<vmem>>, vector<1x8x16xf32>,
    %19 = vector.extract_strided_slice %2 {offsets = [0, 64], sizes = [8, 16], strides = [1, 1]} : vector<8x576xf32> to vector<8x16xf32>
    %c4 = arith.constant 4 : index
    %c0_12 = arith.constant 0 : index
    %c0_13 = arith.constant 0 : index
    %20 = vector.load %arg6[%c4, %c0_12, %c0_13] : memref<36x8x16xf32, #tpu.memory_space<vmem>>, vector<1x8x16xf32>
    %21 = vector.shape_cast %20 : vector<1x8x16xf32> to vector<8x16xf32>
    %22 = vector.shape_cast %19 : vector<8x16xf32> to vector<1x8x16xf32>
    tpu.vector_store %arg6[%c4, %c0_12, %c0_13], %22 {strides = array<i32>} : memref<36x8x16xf32, #tpu.memory_space<vmem>>, vector<1x8x16xf32>,
    %23 = vector.extract_strided_slice %2 {offsets = [0, 80], sizes = [8, 16], strides = [1, 1]} : vector<8x576xf32> to vector<8x16xf32>
    %c5 = arith.constant 5 : index
    %c0_14 = arith.constant 0 : index
    %c0_15 = arith.constant 0 : index
    %24 = vector.load %arg6[%c5, %c0_14, %c0_15] : memref<36x8x16xf32, #tpu.memory_space<vmem>>, vector<1x8x16xf32>
    %25 = vector.shape_cast %24 : vector<1x8x16xf32> to vector<8x16xf32>
    %26 = vector.shape_cast %23 : vector<8x16xf32> to vector<1x8x16xf32>
    tpu.vector_store %arg6[%c5, %c0_14, %c0_15], %26 {strides = array<i32>} : memref<36x8x16xf32, #tpu.memory_space<vmem>>, vector<1x8x16xf32>,
    %27 = vector.extract_strided_slice %2 {offsets = [0, 96], sizes = [8, 16], strides = [1, 1]} : vector<8x576xf32> to vector<8x16xf32>
    %c6 = arith.constant 6 : index
    %c0_16 = arith.constant 0 : index
    %c0_17 = arith.constant 0 : index
    %28 = vector.load %arg6[%c6, %c0_16, %c0_17] : memref<36x8x16xf32, #tpu.memory_space<vmem>>, vector<1x8x16xf32>
    %29 = vector.shape_cast %28 : vector<1x8x16xf32> to vector<8x16xf32>
    %30 = vector.shape_cast %27 : vector<8x16xf32> to vector<1x8x16xf32>
    tpu.vector_store %arg6[%c6, %c0_16, %c0_17], %30 {strides = array<i32>} : memref<36x8x16xf32, #tpu.memory_space<vmem>>, vector<1x8x16xf32>,
    %31 = vector.extract_strided_slice %2 {offsets = [0, 112], sizes = [8, 16], strides = [1, 1]} : vector<8x576xf32> to vector<8x16xf32>
    %c7 = arith.constant 7 : index
    %c0_18 = arith.constant 0 : index
    %c0_19 = arith.constant 0 : index
    %32 = vector.load %arg6[%c7, %c0_18, %c0_19] : memref<36x8x16xf32, #tpu.memory_space<vmem>>, vector<1x8x16xf32>
    %33 = vector.shape_cast %32 : vector<1x8x16xf32> to vector<8x16xf32>
    %34 = vector.shape_cast %31 : vector<8x16xf32> to vector<1x8x16xf32>
    tpu.vector_store %arg6[%c7, %c0_18, %c0_19], %34 {strides = array<i32>} : memref<36x8x16xf32, #tpu.memory_space<vmem>>, vector<1x8x16xf32>,
    %35 = vector.extract_strided_slice %2 {offsets = [0, 128], sizes = [8, 16], strides = [1, 1]} : vector<8x576xf32> to vector<8x16xf32>
    %c8 = arith.constant 8 : index
    %c0_20 = arith.constant 0 : index
    %c0_21 = arith.constant 0 : index
    %36 = vector.load %arg6[%c8, %c0_20, %c0_21] : memref<36x8x16xf32, #tpu.memory_space<vmem>>, vector<1x8x16xf32>
    %37 = vector.shape_cast %36 : vector<1x8x16xf32> to vector<8x16xf32>
    %38 = vector.shape_cast %35 : vector<8x16xf32> to vector<1x8x16xf32>
    tpu.vector_store %arg6[%c8, %c0_20, %c0_21], %38 {strides = array<i32>} : memref<36x8x16xf32, #tpu.memory_space<vmem>>, vector<1x8x16xf32>,
    %39 = vector.extract_strided_slice %2 {offsets = [0, 144], sizes = [8, 16], strides = [1, 1]} : vector<8x576xf32> to vector<8x16xf32>
    %c9 = arith.constant 9 : index
    %c0_22 = arith.constant 0 : index
    %c0_23 = arith.constant 0 : index
    %40 = vector.load %arg6[%c9, %c0_22, %c0_23] : memref<36x8x16xf32, #tpu.memory_space<vmem>>, vector<1x8x16xf32>
    %41 = vector.shape_cast %40 : vector<1x8x16xf32> to vector<8x16xf32>
    %42 = vector.shape_cast %39 : vector<8x16xf32> to vector<1x8x16xf32>
    tpu.vector_store %arg6[%c9, %c0_22, %c0_23], %42 {strides = array<i32>} : memref<36x8x16xf32, #tpu.memory_space<vmem>>, vector<1x8x16xf32>,
    %43 = vector.extract_strided_slice %2 {offsets = [0, 160], sizes = [8, 16], strides = [1, 1]} : vector<8x576xf32> to vector<8x16xf32>
    %c10 = arith.constant 10 : index
    %c0_24 = arith.constant 0 : index
    %c0_25 = arith.constant 0 : index
    %44 = vector.load %arg6[%c10, %c0_24, %c0_25] : memref<36x8x16xf32, #tpu.memory_space<vmem>>, vector<1x8x16xf32>
    %45 = vector.shape_cast %44 : vector<1x8x16xf32> to vector<8x16xf32>
    %46 = vector.shape_cast %43 : vector<8x16xf32> to vector<1x8x16xf32>
    tpu.vector_store %arg6[%c10, %c0_24, %c0_25], %46 {strides = array<i32>} : memref<36x8x16xf32, #tpu.memory_space<vmem>>, vector<1x8x16xf32>,
    %47 = vector.extract_strided_slice %2 {offsets = [0, 176], sizes = [8, 16], strides = [1, 1]} : vector<8x576xf32> to vector<8x16xf32>
    %c11 = arith.constant 11 : index
    %c0_26 = arith.constant 0 : index
    %c0_27 = arith.constant 0 : index
    %48 = vector.load %arg6[%c11, %c0_26, %c0_27] : memref<36x8x16xf32, #tpu.memory_space<vmem>>, vector<1x8x16xf32>
    %49 = vector.shape_cast %48 : vector<1x8x16xf32> to vector<8x16xf32>
    %50 = vector.shape_cast %47 : vector<8x16xf32> to vector<1x8x16xf32>
    tpu.vector_store %arg6[%c11, %c0_26, %c0_27], %50 {strides = array<i32>} : memref<36x8x16xf32, #tpu.memory_space<vmem>>, vector<1x8x16xf32>,
    %51 = vector.extract_strided_slice %2 {offsets = [0, 192], sizes = [8, 16], strides = [1, 1]} : vector<8x576xf32> to vector<8x16xf32>
    %c12 = arith.constant 12 : index
    %c0_28 = arith.constant 0 : index
    %c0_29 = arith.constant 0 : index
    %52 = vector.load %arg6[%c12, %c0_28, %c0_29] : memref<36x8x16xf32, #tpu.memory_space<vmem>>, vector<1x8x16xf32>
    %53 = vector.shape_cast %52 : vector<1x8x16xf32> to vector<8x16xf32>
    %54 = vector.shape_cast %51 : vector<8x16xf32> to vector<1x8x16xf32>
    tpu.vector_store %arg6[%c12, %c0_28, %c0_29], %54 {strides = array<i32>} : memref<36x8x16xf32, #tpu.memory_space<vmem>>, vector<1x8x16xf32>,
    %55 = vector.extract_strided_slice %2 {offsets = [0, 208], sizes = [8, 16], strides = [1, 1]} : vector<8x576xf32> to vector<8x16xf32>
    %c13 = arith.constant 13 : index
    %c0_30 = arith.constant 0 : index
    %c0_31 = arith.constant 0 : index
    %56 = vector.load %arg6[%c13, %c0_30, %c0_31] : memref<36x8x16xf32, #tpu.memory_space<vmem>>, vector<1x8x16xf32>
    %57 = vector.shape_cast %56 : vector<1x8x16xf32> to vector<8x16xf32>
    %58 = vector.shape_cast %55 : vector<8x16xf32> to vector<1x8x16xf32>
    tpu.vector_store %arg6[%c13, %c0_30, %c0_31], %58 {strides = array<i32>} : memref<36x8x16xf32, #tpu.memory_space<vmem>>, vector<1x8x16xf32>,
    %59 = vector.extract_strided_slice %2 {offsets = [0, 224], sizes = [8, 16], strides = [1, 1]} : vector<8x576xf32> to vector<8x16xf32>
    %c14 = arith.constant 14 : index
    %c0_32 = arith.constant 0 : index
    %c0_33 = arith.constant 0 : index
    %60 = vector.load %arg6[%c14, %c0_32, %c0_33] : memref<36x8x16xf32, #tpu.memory_space<vmem>>, vector<1x8x16xf32>
    %61 = vector.shape_cast %60 : vector<1x8x16xf32> to vector<8x16xf32>
    %62 = vector.shape_cast %59 : vector<8x16xf32> to vector<1x8x16xf32>
    tpu.vector_store %arg6[%c14, %c0_32, %c0_33], %62 {strides = array<i32>} : memref<36x8x16xf32, #tpu.memory_space<vmem>>, vector<1x8x16xf32>,
    %63 = vector.extract_strided_slice %2 {offsets = [0, 240], sizes = [8, 16], strides = [1, 1]} : vector<8x576xf32> to vector<8x16xf32>
    %c15 = arith.constant 15 : index
    %c0_34 = arith.constant 0 : index
    %c0_35 = arith.constant 0 : index
    %64 = vector.load %arg6[%c15, %c0_34, %c0_35] : memref<36x8x16xf32, #tpu.memory_space<vmem>>, vector<1x8x16xf32>
    %65 = vector.shape_cast %64 : vector<1x8x16xf32> to vector<8x16xf32>
    %66 = vector.shape_cast %63 : vector<8x16xf32> to vector<1x8x16xf32>
    tpu.vector_store %arg6[%c15, %c0_34, %c0_35], %66 {strides = array<i32>} : memref<36x8x16xf32, #tpu.memory_space<vmem>>, vector<1x8x16xf32>,
    %67 = vector.extract_strided_slice %2 {offsets = [0, 256], sizes = [8, 16], strides = [1, 1]} : vector<8x576xf32> to vector<8x16xf32>
    %c16 = arith.constant 16 : index
    %c0_36 = arith.constant 0 : index
    %c0_37 = arith.constant 0 : index
    %68 = vector.load %arg6[%c16, %c0_36, %c0_37] : memref<36x8x16xf32, #tpu.memory_space<vmem>>, vector<1x8x16xf32>
    %69 = vector.shape_cast %68 : vector<1x8x16xf32> to vector<8x16xf32>
    %70 = vector.shape_cast %67 : vector<8x16xf32> to vector<1x8x16xf32>
    tpu.vector_store %arg6[%c16, %c0_36, %c0_37], %70 {strides = array<i32>} : memref<36x8x16xf32, #tpu.memory_space<vmem>>, vector<1x8x16xf32>,
    %71 = vector.extract_strided_slice %2 {offsets = [0, 272], sizes = [8, 16], strides = [1, 1]} : vector<8x576xf32> to vector<8x16xf32>
    %c17 = arith.constant 17 : index
    %c0_38 = arith.constant 0 : index
    %c0_39 = arith.constant 0 : index
    %72 = vector.load %arg6[%c17, %c0_38, %c0_39] : memref<36x8x16xf32, #tpu.memory_space<vmem>>, vector<1x8x16xf32>
    %73 = vector.shape_cast %72 : vector<1x8x16xf32> to vector<8x16xf32>
    %74 = vector.shape_cast %71 : vector<8x16xf32> to vector<1x8x16xf32>
    tpu.vector_store %arg6[%c17, %c0_38, %c0_39], %74 {strides = array<i32>} : memref<36x8x16xf32, #tpu.memory_space<vmem>>, vector<1x8x16xf32>,
    %75 = vector.extract_strided_slice %2 {offsets = [0, 288], sizes = [8, 16], strides = [1, 1]} : vector<8x576xf32> to vector<8x16xf32>
    %c18 = arith.constant 18 : index
    %c0_40 = arith.constant 0 : index
    %c0_41 = arith.constant 0 : index
    %76 = vector.load %arg6[%c18, %c0_40, %c0_41] : memref<36x8x16xf32, #tpu.memory_space<vmem>>, vector<1x8x16xf32>
    %77 = vector.shape_cast %76 : vector<1x8x16xf32> to vector<8x16xf32>
    %78 = vector.shape_cast %75 : vector<8x16xf32> to vector<1x8x16xf32>
    tpu.vector_store %arg6[%c18, %c0_40, %c0_41], %78 {strides = array<i32>} : memref<36x8x16xf32, #tpu.memory_space<vmem>>, vector<1x8x16xf32>,
    %79 = vector.extract_strided_slice %2 {offsets = [0, 304], sizes = [8, 16], strides = [1, 1]} : vector<8x576xf32> to vector<8x16xf32>
    %c19 = arith.constant 19 : index
    %c0_42 = arith.constant 0 : index
    %c0_43 = arith.constant 0 : index
    %80 = vector.load %arg6[%c19, %c0_42, %c0_43] : memref<36x8x16xf32, #tpu.memory_space<vmem>>, vector<1x8x16xf32>
    %81 = vector.shape_cast %80 : vector<1x8x16xf32> to vector<8x16xf32>
    %82 = vector.shape_cast %79 : vector<8x16xf32> to vector<1x8x16xf32>
    tpu.vector_store %arg6[%c19, %c0_42, %c0_43], %82 {strides = array<i32>} : memref<36x8x16xf32, #tpu.memory_space<vmem>>, vector<1x8x16xf32>,
    %83 = vector.extract_strided_slice %2 {offsets = [0, 320], sizes = [8, 16], strides = [1, 1]} : vector<8x576xf32> to vector<8x16xf32>
    %c20 = arith.constant 20 : index
    %c0_44 = arith.constant 0 : index
    %c0_45 = arith.constant 0 : index
    %84 = vector.load %arg6[%c20, %c0_44, %c0_45] : memref<36x8x16xf32, #tpu.memory_space<vmem>>, vector<1x8x16xf32>
    %85 = vector.shape_cast %84 : vector<1x8x16xf32> to vector<8x16xf32>
    %86 = vector.shape_cast %83 : vector<8x16xf32> to vector<1x8x16xf32>
    tpu.vector_store %arg6[%c20, %c0_44, %c0_45], %86 {strides = array<i32>} : memref<36x8x16xf32, #tpu.memory_space<vmem>>, vector<1x8x16xf32>,
    %87 = vector.extract_strided_slice %2 {offsets = [0, 336], sizes = [8, 16], strides = [1, 1]} : vector<8x576xf32> to vector<8x16xf32>
    %c21 = arith.constant 21 : index
    %c0_46 = arith.constant 0 : index
    %c0_47 = arith.constant 0 : index
    %88 = vector.load %arg6[%c21, %c0_46, %c0_47] : memref<36x8x16xf32, #tpu.memory_space<vmem>>, vector<1x8x16xf32>
    %89 = vector.shape_cast %88 : vector<1x8x16xf32> to vector<8x16xf32>
    %90 = vector.shape_cast %87 : vector<8x16xf32> to vector<1x8x16xf32>
    tpu.vector_store %arg6[%c21, %c0_46, %c0_47], %90 {strides = array<i32>} : memref<36x8x16xf32, #tpu.memory_space<vmem>>, vector<1x8x16xf32>,
    %91 = vector.extract_strided_slice %2 {offsets = [0, 352], sizes = [8, 16], strides = [1, 1]} : vector<8x576xf32> to vector<8x16xf32>
    %c22 = arith.constant 22 : index
    %c0_48 = arith.constant 0 : index
    %c0_49 = arith.constant 0 : index
    %92 = vector.load %arg6[%c22, %c0_48, %c0_49] : memref<36x8x16xf32, #tpu.memory_space<vmem>>, vector<1x8x16xf32>
    %93 = vector.shape_cast %92 : vector<1x8x16xf32> to vector<8x16xf32>
    %94 = vector.shape_cast %91 : vector<8x16xf32> to vector<1x8x16xf32>
    tpu.vector_store %arg6[%c22, %c0_48, %c0_49], %94 {strides = array<i32>} : memref<36x8x16xf32, #tpu.memory_space<vmem>>, vector<1x8x16xf32>,
    %95 = vector.extract_strided_slice %2 {offsets = [0, 368], sizes = [8, 16], strides = [1, 1]} : vector<8x576xf32> to vector<8x16xf32>
    %c23 = arith.constant 23 : index
    %c0_50 = arith.constant 0 : index
    %c0_51 = arith.constant 0 : index
    %96 = vector.load %arg6[%c23, %c0_50, %c0_51] : memref<36x8x16xf32, #tpu.memory_space<vmem>>, vector<1x8x16xf32>
    %97 = vector.shape_cast %96 : vector<1x8x16xf32> to vector<8x16xf32>
    %98 = vector.shape_cast %95 : vector<8x16xf32> to vector<1x8x16xf32>
    tpu.vector_store %arg6[%c23, %c0_50, %c0_51], %98 {strides = array<i32>} : memref<36x8x16xf32, #tpu.memory_space<vmem>>, vector<1x8x16xf32>,
    %99 = vector.extract_strided_slice %2 {offsets = [0, 384], sizes = [8, 16], strides = [1, 1]} : vector<8x576xf32> to vector<8x16xf32>
    %c24 = arith.constant 24 : index
    %c0_52 = arith.constant 0 : index
    %c0_53 = arith.constant 0 : index
    %100 = vector.load %arg6[%c24, %c0_52, %c0_53] : memref<36x8x16xf32, #tpu.memory_space<vmem>>, vector<1x8x16xf32>
    %101 = vector.shape_cast %100 : vector<1x8x16xf32> to vector<8x16xf32>
    %102 = vector.shape_cast %99 : vector<8x16xf32> to vector<1x8x16xf32>
    tpu.vector_store %arg6[%c24, %c0_52, %c0_53], %102 {strides = array<i32>} : memref<36x8x16xf32, #tpu.memory_space<vmem>>, vector<1x8x16xf32>,
    %103 = vector.extract_strided_slice %2 {offsets = [0, 400], sizes = [8, 16], strides = [1, 1]} : vector<8x576xf32> to vector<8x16xf32>
    %c25 = arith.constant 25 : index
    %c0_54 = arith.constant 0 : index
    %c0_55 = arith.constant 0 : index
    %104 = vector.load %arg6[%c25, %c0_54, %c0_55] : memref<36x8x16xf32, #tpu.memory_space<vmem>>, vector<1x8x16xf32>
    %105 = vector.shape_cast %104 : vector<1x8x16xf32> to vector<8x16xf32>
    %106 = vector.shape_cast %103 : vector<8x16xf32> to vector<1x8x16xf32>
    tpu.vector_store %arg6[%c25, %c0_54, %c0_55], %106 {strides = array<i32>} : memref<36x8x16xf32, #tpu.memory_space<vmem>>, vector<1x8x16xf32>,
    %107 = vector.extract_strided_slice %2 {offsets = [0, 416], sizes = [8, 16], strides = [1, 1]} : vector<8x576xf32> to vector<8x16xf32>
    %c26 = arith.constant 26 : index
    %c0_56 = arith.constant 0 : index
    %c0_57 = arith.constant 0 : index
    %108 = vector.load %arg6[%c26, %c0_56, %c0_57] : memref<36x8x16xf32, #tpu.memory_space<vmem>>, vector<1x8x16xf32>
    %109 = vector.shape_cast %108 : vector<1x8x16xf32> to vector<8x16xf32>
    %110 = vector.shape_cast %107 : vector<8x16xf32> to vector<1x8x16xf32>
    tpu.vector_store %arg6[%c26, %c0_56, %c0_57], %110 {strides = array<i32>} : memref<36x8x16xf32, #tpu.memory_space<vmem>>, vector<1x8x16xf32>,
    %111 = vector.extract_strided_slice %2 {offsets = [0, 432], sizes = [8, 16], strides = [1, 1]} : vector<8x576xf32> to vector<8x16xf32>
    %c27 = arith.constant 27 : index
    %c0_58 = arith.constant 0 : index
    %c0_59 = arith.constant 0 : index
    %112 = vector.load %arg6[%c27, %c0_58, %c0_59] : memref<36x8x16xf32, #tpu.memory_space<vmem>>, vector<1x8x16xf32>
    %113 = vector.shape_cast %112 : vector<1x8x16xf32> to vector<8x16xf32>
    %114 = vector.shape_cast %111 : vector<8x16xf32> to vector<1x8x16xf32>
    tpu.vector_store %arg6[%c27, %c0_58, %c0_59], %114 {strides = array<i32>} : memref<36x8x16xf32, #tpu.memory_space<vmem>>, vector<1x8x16xf32>,
    %115 = vector.extract_strided_slice %2 {offsets = [0, 448], sizes = [8, 16], strides = [1, 1]} : vector<8x576xf32> to vector<8x16xf32>
    %c28 = arith.constant 28 : index
    %c0_60 = arith.constant 0 : index
    %c0_61 = arith.constant 0 : index
    %116 = vector.load %arg6[%c28, %c0_60, %c0_61] : memref<36x8x16xf32, #tpu.memory_space<vmem>>, vector<1x8x16xf32>
    %117 = vector.shape_cast %116 : vector<1x8x16xf32> to vector<8x16xf32>
    %118 = vector.shape_cast %115 : vector<8x16xf32> to vector<1x8x16xf32>
    tpu.vector_store %arg6[%c28, %c0_60, %c0_61], %118 {strides = array<i32>} : memref<36x8x16xf32, #tpu.memory_space<vmem>>, vector<1x8x16xf32>,
    %119 = vector.extract_strided_slice %2 {offsets = [0, 464], sizes = [8, 16], strides = [1, 1]} : vector<8x576xf32> to vector<8x16xf32>
    %c29 = arith.constant 29 : index
    %c0_62 = arith.constant 0 : index
    %c0_63 = arith.constant 0 : index
    %120 = vector.load %arg6[%c29, %c0_62, %c0_63] : memref<36x8x16xf32, #tpu.memory_space<vmem>>, vector<1x8x16xf32>
    %121 = vector.shape_cast %120 : vector<1x8x16xf32> to vector<8x16xf32>
    %122 = vector.shape_cast %119 : vector<8x16xf32> to vector<1x8x16xf32>
    tpu.vector_store %arg6[%c29, %c0_62, %c0_63], %122 {strides = array<i32>} : memref<36x8x16xf32, #tpu.memory_space<vmem>>, vector<1x8x16xf32>,
    %123 = vector.extract_strided_slice %2 {offsets = [0, 480], sizes = [8, 16], strides = [1, 1]} : vector<8x576xf32> to vector<8x16xf32>
    %c30 = arith.constant 30 : index
    %c0_64 = arith.constant 0 : index
    %c0_65 = arith.constant 0 : index
    %124 = vector.load %arg6[%c30, %c0_64, %c0_65] : memref<36x8x16xf32, #tpu.memory_space<vmem>>, vector<1x8x16xf32>
    %125 = vector.shape_cast %124 : vector<1x8x16xf32> to vector<8x16xf32>
    %126 = vector.shape_cast %123 : vector<8x16xf32> to vector<1x8x16xf32>
    tpu.vector_store %arg6[%c30, %c0_64, %c0_65], %126 {strides = array<i32>} : memref<36x8x16xf32, #tpu.memory_space<vmem>>, vector<1x8x16xf32>,
    %127 = vector.extract_strided_slice %2 {offsets = [0, 496], sizes = [8, 16], strides = [1, 1]} : vector<8x576xf32> to vector<8x16xf32>
    %c31 = arith.constant 31 : index
    %c0_66 = arith.constant 0 : index
    %c0_67 = arith.constant 0 : index
    %128 = vector.load %arg6[%c31, %c0_66, %c0_67] : memref<36x8x16xf32, #tpu.memory_space<vmem>>, vector<1x8x16xf32>
    %129 = vector.shape_cast %128 : vector<1x8x16xf32> to vector<8x16xf32>
    %130 = vector.shape_cast %127 : vector<8x16xf32> to vector<1x8x16xf32>
    tpu.vector_store %arg6[%c31, %c0_66, %c0_67], %130 {strides = array<i32>} : memref<36x8x16xf32, #tpu.memory_space<vmem>>, vector<1x8x16xf32>,
    %131 = vector.extract_strided_slice %2 {offsets = [0, 512], sizes = [8, 16], strides = [1, 1]} : vector<8x576xf32> to vector<8x16xf32>
    %c32 = arith.constant 32 : index
    %c0_68 = arith.constant 0 : index
    %c0_69 = arith.constant 0 : index
    %132 = vector.load %arg6[%c32, %c0_68, %c0_69] : memref<36x8x16xf32, #tpu.memory_space<vmem>>, vector<1x8x16xf32>
    %133 = vector.shape_cast %132 : vector<1x8x16xf32> to vector<8x16xf32>
    %134 = vector.shape_cast %131 : vector<8x16xf32> to vector<1x8x16xf32>
    tpu.vector_store %arg6[%c32, %c0_68, %c0_69], %134 {strides = array<i32>} : memref<36x8x16xf32, #tpu.memory_space<vmem>>, vector<1x8x16xf32>,
    %135 = vector.extract_strided_slice %2 {offsets = [0, 528], sizes = [8, 16], strides = [1, 1]} : vector<8x576xf32> to vector<8x16xf32>
    %c33 = arith.constant 33 : index
    %c0_70 = arith.constant 0 : index
    %c0_71 = arith.constant 0 : index
    %136 = vector.load %arg6[%c33, %c0_70, %c0_71] : memref<36x8x16xf32, #tpu.memory_space<vmem>>, vector<1x8x16xf32>
    %137 = vector.shape_cast %136 : vector<1x8x16xf32> to vector<8x16xf32>
    %138 = vector.shape_cast %135 : vector<8x16xf32> to vector<1x8x16xf32>
    tpu.vector_store %arg6[%c33, %c0_70, %c0_71], %138 {strides = array<i32>} : memref<36x8x16xf32, #tpu.memory_space<vmem>>, vector<1x8x16xf32>,
    %139 = vector.extract_strided_slice %2 {offsets = [0, 544], sizes = [8, 16], strides = [1, 1]} : vector<8x576xf32> to vector<8x16xf32>
    %c34 = arith.constant 34 : index
    %c0_72 = arith.constant 0 : index
    %c0_73 = arith.constant 0 : index
    %140 = vector.load %arg6[%c34, %c0_72, %c0_73] : memref<36x8x16xf32, #tpu.memory_space<vmem>>, vector<1x8x16xf32>
    %141 = vector.shape_cast %140 : vector<1x8x16xf32> to vector<8x16xf32>
    %142 = vector.shape_cast %139 : vector<8x16xf32> to vector<1x8x16xf32>
    tpu.vector_store %arg6[%c34, %c0_72, %c0_73], %142 {strides = array<i32>} : memref<36x8x16xf32, #tpu.memory_space<vmem>>, vector<1x8x16xf32>,
    %143 = vector.extract_strided_slice %2 {offsets = [0, 560], sizes = [8, 16], strides = [1, 1]} : vector<8x576xf32> to vector<8x16xf32>
    %c35 = arith.constant 35 : index
    %c0_74 = arith.constant 0 : index
    %c0_75 = arith.constant 0 : index
    %144 = vector.load %arg6[%c35, %c0_74, %c0_75] : memref<36x8x16xf32, #tpu.memory_space<vmem>>, vector<1x8x16xf32>
    %145 = vector.shape_cast %144 : vector<1x8x16xf32> to vector<8x16xf32>
    %146 = vector.shape_cast %143 : vector<8x16xf32> to vector<1x8x16xf32>
    tpu.vector_store %arg6[%c35, %c0_74, %c0_75], %146 {strides = array<i32>} : memref<36x8x16xf32, #tpu.memory_space<vmem>>, vector<1x8x16xf32>,
    %c0_76 = arith.constant 0 : index
    %c0_77 = arith.constant 0 : index
    %c0_78 = arith.constant 0 : index
    %147 = vector.load %arg6[%c0_76, %c0_77, %c0_78] : memref<36x8x16xf32, #tpu.memory_space<vmem>>, vector<36x8x16xf32>
    %148 = vector.extract_strided_slice %147 {offsets = [0, 0, 0], sizes = [12, 8, 16], strides = [1, 1, 1]} : vector<36x8x16xf32> to vector<12x8x16xf32>
    %149 = arith.truncf %148 : vector<12x8x16xf32> to vector<12x8x16xbf16>
    %150 = vector.extract_strided_slice %147 {offsets = [12, 0, 0], sizes = [12, 8, 16], strides = [1, 1, 1]} : vector<36x8x16xf32> to vector<12x8x16xf32>
    %151 = arith.truncf %150 : vector<12x8x16xf32> to vector<12x8x16xbf16>
    %152 = vector.extract_strided_slice %147 {offsets = [24, 0, 0], sizes = [12, 8, 16], strides = [1, 1, 1]} : vector<36x8x16xf32> to vector<12x8x16xf32>
    %153 = arith.truncf %152 : vector<12x8x16xf32> to vector<12x8x16xbf16>
    %cst_79 = arith.constant dense<0.000000e+00> : vector<12x8x8xf32>
    %154 = tpu.matmul %149, %151, %cst_79 {dimension_numbers = #tpu.dot_dimension_numbers<[2], [2], [1], [1], [0, 0, 0, 1, 1, 1], [0], [0]>} : vector<12x8x16xbf16>, vector<12x8x16xbf16>, vector<12x8x8xf32> -> vector<12x8x8xf32>
    %cst_80 = arith.constant dense<0xFF800000> : vector<8x8xf32>
    %155 = vector.multi_reduction <maximumf>, %154, %cst_80 [0] : vector<12x8x8xf32> to vector<8x8xf32>
    %156 = vector.shape_cast %155 : vector<8x8xf32> to vector<1x8x8xf32>
    %157 = vector.broadcast %156 : vector<1x8x8xf32> to vector<12x8x8xf32>
    %158 = arith.subf %154, %157 : vector<12x8x8xf32>
    %159 = math.exp %158 : vector<12x8x8xf32>
    %cst_81 = arith.constant dense<0.000000e+00> : vector<8x8xf32>
    %160 = vector.multi_reduction <add>, %159, %cst_81 [0] : vector<12x8x8xf32> to vector<8x8xf32>
    %161 = vector.shape_cast %160 : vector<8x8xf32> to vector<1x8x8xf32>
    %162 = tpu.reciprocal %161 {approx = true} : vector<1x8x8xf32> -> vector<1x8x8xf32>
    %163 = vector.broadcast %162 : vector<1x8x8xf32> to vector<12x8x8xf32>
    %164 = arith.mulf %159, %163 : vector<12x8x8xf32>
    %165 = arith.truncf %164 : vector<12x8x8xf32> to vector<12x8x8xbf16>
    %cst_82 = arith.constant dense<0.000000e+00> : vector<12x8x16xf32>
    %166 = tpu.matmul %165, %153, %cst_82 {dimension_numbers = #tpu.dot_dimension_numbers<[2], [1], [1], [2], [0, 0, 0, 1, 1, 2], [0], [0]>} : vector<12x8x8xbf16>, vector<12x8x16xbf16>, vector<12x8x16xf32> -> vector<12x8x16xf32>
    %167 = vector.extract_strided_slice %166 {offsets = [0, 0, 0], sizes = [1, 8, 16], strides = [1, 1, 1]} : vector<12x8x16xf32> to vector<1x8x16xf32>
    %168 = vector.shape_cast %167 : vector<1x8x16xf32> to vector<8x16xf32>
    %c0_83 = arith.constant 0 : index
    %c0_84 = arith.constant 0 : index
    %169 = vector.load %arg7[%c0_83, %c0_84] : memref<8x192xf32, #tpu.memory_space<vmem>>, vector<8x16xf32>
    tpu.vector_store %arg7[%c0_83, %c0_84], %168 {strides = array<i32>} : memref<8x192xf32, #tpu.memory_space<vmem>>, vector<8x16xf32>,
    %170 = vector.extract_strided_slice %166 {offsets = [1, 0, 0], sizes = [1, 8, 16], strides = [1, 1, 1]} : vector<12x8x16xf32> to vector<1x8x16xf32>
    %171 = vector.shape_cast %170 : vector<1x8x16xf32> to vector<8x16xf32>
    %c0_85 = arith.constant 0 : index
    %c16_86 = arith.constant 16 : index
    %172 = vector.load %arg7[%c0_85, %c16_86] : memref<8x192xf32, #tpu.memory_space<vmem>>, vector<8x16xf32>
    tpu.vector_store %arg7[%c0_85, %c16_86], %171 {strides = array<i32>} : memref<8x192xf32, #tpu.memory_space<vmem>>, vector<8x16xf32>,
    %173 = vector.extract_strided_slice %166 {offsets = [2, 0, 0], sizes = [1, 8, 16], strides = [1, 1, 1]} : vector<12x8x16xf32> to vector<1x8x16xf32>
    %174 = vector.shape_cast %173 : vector<1x8x16xf32> to vector<8x16xf32>
    %c0_87 = arith.constant 0 : index
    %c32_88 = arith.constant 32 : index
    %175 = vector.load %arg7[%c0_87, %c32_88] : memref<8x192xf32, #tpu.memory_space<vmem>>, vector<8x16xf32>
    tpu.vector_store %arg7[%c0_87, %c32_88], %174 {strides = array<i32>} : memref<8x192xf32, #tpu.memory_space<vmem>>, vector<8x16xf32>,
    %176 = vector.extract_strided_slice %166 {offsets = [3, 0, 0], sizes = [1, 8, 16], strides = [1, 1, 1]} : vector<12x8x16xf32> to vector<1x8x16xf32>
    %177 = vector.shape_cast %176 : vector<1x8x16xf32> to vector<8x16xf32>
    %c0_89 = arith.constant 0 : index
    %c48 = arith.constant 48 : index
    %178 = vector.load %arg7[%c0_89, %c48] : memref<8x192xf32, #tpu.memory_space<vmem>>, vector<8x16xf32>
    tpu.vector_store %arg7[%c0_89, %c48], %177 {strides = array<i32>} : memref<8x192xf32, #tpu.memory_space<vmem>>, vector<8x16xf32>,
    %179 = vector.extract_strided_slice %166 {offsets = [4, 0, 0], sizes = [1, 8, 16], strides = [1, 1, 1]} : vector<12x8x16xf32> to vector<1x8x16xf32>
    %180 = vector.shape_cast %179 : vector<1x8x16xf32> to vector<8x16xf32>
    %c0_90 = arith.constant 0 : index
    %c64 = arith.constant 64 : index
    %181 = vector.load %arg7[%c0_90, %c64] : memref<8x192xf32, #tpu.memory_space<vmem>>, vector<8x16xf32>
    tpu.vector_store %arg7[%c0_90, %c64], %180 {strides = array<i32>} : memref<8x192xf32, #tpu.memory_space<vmem>>, vector<8x16xf32>,
    %182 = vector.extract_strided_slice %166 {offsets = [5, 0, 0], sizes = [1, 8, 16], strides = [1, 1, 1]} : vector<12x8x16xf32> to vector<1x8x16xf32>
    %183 = vector.shape_cast %182 : vector<1x8x16xf32> to vector<8x16xf32>
    %c0_91 = arith.constant 0 : index
    %c80 = arith.constant 80 : index
    %184 = vector.load %arg7[%c0_91, %c80] : memref<8x192xf32, #tpu.memory_space<vmem>>, vector<8x16xf32>
    tpu.vector_store %arg7[%c0_91, %c80], %183 {strides = array<i32>} : memref<8x192xf32, #tpu.memory_space<vmem>>, vector<8x16xf32>,
    %185 = vector.extract_strided_slice %166 {offsets = [6, 0, 0], sizes = [1, 8, 16], strides = [1, 1, 1]} : vector<12x8x16xf32> to vector<1x8x16xf32>
    %186 = vector.shape_cast %185 : vector<1x8x16xf32> to vector<8x16xf32>
    %c0_92 = arith.constant 0 : index
    %c96 = arith.constant 96 : index
    %187 = vector.load %arg7[%c0_92, %c96] : memref<8x192xf32, #tpu.memory_space<vmem>>, vector<8x16xf32>
    tpu.vector_store %arg7[%c0_92, %c96], %186 {strides = array<i32>} : memref<8x192xf32, #tpu.memory_space<vmem>>, vector<8x16xf32>,
    %188 = vector.extract_strided_slice %166 {offsets = [7, 0, 0], sizes = [1, 8, 16], strides = [1, 1, 1]} : vector<12x8x16xf32> to vector<1x8x16xf32>
    %189 = vector.shape_cast %188 : vector<1x8x16xf32> to vector<8x16xf32>
    %c0_93 = arith.constant 0 : index
    %c112 = arith.constant 112 : index
    %190 = vector.load %arg7[%c0_93, %c112] : memref<8x192xf32, #tpu.memory_space<vmem>>, vector<8x16xf32>
    tpu.vector_store %arg7[%c0_93, %c112], %189 {strides = array<i32>} : memref<8x192xf32, #tpu.memory_space<vmem>>, vector<8x16xf32>,
    %191 = vector.extract_strided_slice %166 {offsets = [8, 0, 0], sizes = [1, 8, 16], strides = [1, 1, 1]} : vector<12x8x16xf32> to vector<1x8x16xf32>
    %192 = vector.shape_cast %191 : vector<1x8x16xf32> to vector<8x16xf32>
    %c0_94 = arith.constant 0 : index
    %c128 = arith.constant 128 : index
    %193 = vector.load %arg7[%c0_94, %c128] : memref<8x192xf32, #tpu.memory_space<vmem>>, vector<8x16xf32>
    tpu.vector_store %arg7[%c0_94, %c128], %192 {strides = array<i32>} : memref<8x192xf32, #tpu.memory_space<vmem>>, vector<8x16xf32>,
    %194 = vector.extract_strided_slice %166 {offsets = [9, 0, 0], sizes = [1, 8, 16], strides = [1, 1, 1]} : vector<12x8x16xf32> to vector<1x8x16xf32>
    %195 = vector.shape_cast %194 : vector<1x8x16xf32> to vector<8x16xf32>
    %c0_95 = arith.constant 0 : index
    %c144 = arith.constant 144 : index
    %196 = vector.load %arg7[%c0_95, %c144] : memref<8x192xf32, #tpu.memory_space<vmem>>, vector<8x16xf32>
    tpu.vector_store %arg7[%c0_95, %c144], %195 {strides = array<i32>} : memref<8x192xf32, #tpu.memory_space<vmem>>, vector<8x16xf32>,
    %197 = vector.extract_strided_slice %166 {offsets = [10, 0, 0], sizes = [1, 8, 16], strides = [1, 1, 1]} : vector<12x8x16xf32> to vector<1x8x16xf32>
    %198 = vector.shape_cast %197 : vector<1x8x16xf32> to vector<8x16xf32>
    %c0_96 = arith.constant 0 : index
    %c160 = arith.constant 160 : index
    %199 = vector.load %arg7[%c0_96, %c160] : memref<8x192xf32, #tpu.memory_space<vmem>>, vector<8x16xf32>
    tpu.vector_store %arg7[%c0_96, %c160], %198 {strides = array<i32>} : memref<8x192xf32, #tpu.memory_space<vmem>>, vector<8x16xf32>,
    %200 = vector.extract_strided_slice %166 {offsets = [11, 0, 0], sizes = [1, 8, 16], strides = [1, 1, 1]} : vector<12x8x16xf32> to vector<1x8x16xf32>
    %201 = vector.shape_cast %200 : vector<1x8x16xf32> to vector<8x16xf32>
    %c0_97 = arith.constant 0 : index
    %c176 = arith.constant 176 : index
    %202 = vector.load %arg7[%c0_97, %c176] : memref<8x192xf32, #tpu.memory_space<vmem>>, vector<8x16xf32>
    tpu.vector_store %arg7[%c0_97, %c176], %201 {strides = array<i32>} : memref<8x192xf32, #tpu.memory_space<vmem>>, vector<8x16xf32>,
    %c0_98 = arith.constant 0 : index
    %c0_99 = arith.constant 0 : index
    %203 = vector.load %arg7[%c0_98, %c0_99] : memref<8x192xf32, #tpu.memory_space<vmem>>, vector<8x192xf32>
    %204 = arith.truncf %203 : vector<8x192xf32> to vector<8x192xbf16>
    %c0_100 = arith.constant 0 : index
    %c0_101 = arith.constant 0 : index
    %205 = vector.load %arg3[%c0_100, %c0_101] : memref<192x192xbf16, #tpu.memory_space<vmem>>, vector<192x192xbf16>
    %cst_102 = arith.constant dense<0.000000e+00> : vector<8x192xf32>
    %206 = tpu.matmul %204, %205, %cst_102 {dimension_numbers = #tpu.dot_dimension_numbers<[1], [0], [0], [1], [0, 0, 1, 1], [], []>} : vector<8x192xbf16>, vector<192x192xbf16>, vector<8x192xf32> -> vector<8x192xf32>
    %c0_103 = arith.constant 0 : index
    %c0_104 = arith.constant 0 : index
    %207 = vector.load %arg4[%c0_103, %c0_104] : memref<1x192xf32, #tpu.memory_space<vmem>>, vector<1x192xf32>
    %208 = vector.broadcast %207 : vector<1x192xf32> to vector<8x192xf32>
    %209 = arith.addf %206, %208 : vector<8x192xf32>
    %c0_105 = arith.constant 0 : index
    %c0_106 = arith.constant 0 : index
    %210 = vector.load %arg5[%c0_105, %c0_106] : memref<8x192xf32, #tpu.memory_space<vmem>>, vector<8x192xf32>
    tpu.vector_store %arg5[%c0_105, %c0_106], %209 {strides = array<i32>} : memref<8x192xf32, #tpu.memory_space<vmem>>, vector<8x192xf32>,
    return
  }
  func.func @transform_0(%arg0: i32) -> (i32, i32) {
    %c0_i32 = arith.constant 0 : i32
    %c0_i32_0 = arith.constant 0 : i32
    return %arg0, %c0_i32 : i32, i32
  }
  func.func @transform_1(%arg0: i32) -> (i32, i32) {
    %c0_i32 = arith.constant 0 : i32
    %c0_i32_0 = arith.constant 0 : i32
    %c0_i32_1 = arith.constant 0 : i32
    return %c0_i32, %c0_i32_0 : i32, i32
  }
  func.func @transform_2(%arg0: i32) -> (i32, i32) {
    %c0_i32 = arith.constant 0 : i32
    %c0_i32_0 = arith.constant 0 : i32
    %c0_i32_1 = arith.constant 0 : i32
    return %c0_i32, %c0_i32_0 : i32, i32
  }
  func.func @transform_3(%arg0: i32) -> (i32, i32) {
    %c0_i32 = arith.constant 0 : i32
    %c0_i32_0 = arith.constant 0 : i32
    %c0_i32_1 = arith.constant 0 : i32
    return %c0_i32, %c0_i32_0 : i32, i32
  }
  func.func @transform_4(%arg0: i32) -> (i32, i32) {
    %c0_i32 = arith.constant 0 : i32
    %c0_i32_0 = arith.constant 0 : i32
    return %arg0, %c0_i32 : i32, i32
  }
}

</mosaic_0001>

<bundles_post_ra>
// kernel: tpu_custom_call.1
= control target key start
LH: loop header
LB: loop body
LE: loop exit
PB: predicated region body
PF: predicated region fallthrough
CT: control target
= control target key end

     0   :  { %9 = vsyncpa [#allocation5], 0  ;;  %s3855_s0 = inlined_call_operand.hbm [shape: bf16[16,192], index: 0, kind: input, shape index: {}]   ;;  %s3856_s1 = inlined_call_operand.hbm [shape: bf16[192,576], index: 1, kind: input, shape index: {}]   ;;  %s3857_s2 = inlined_call_operand.hbm [shape: bf16[192,192], index: 2, kind: input, shape index: {}]   ;;  %s3858_s3 = inlined_call_operand.vmem [shape: f32[1,192], index: 3, kind: input, shape index: {}]   ;;  %s3859_s4 = inlined_call_operand.hbm [shape: f32[16,192], index: 4, kind: output, shape index: {}]  }
   0x1   :  { %11 = vsyncpa [#allocation5 + $0x1], 0 }
   0x2   :  { %12 = vsyncpa [#allocation8], 0 }
   0x3   :  { %13 = vsyncpa [#allocation6], 0 }
   0x4   :  { %15 = vsyncpa [#allocation6 + $0x1], 0  ;;  %s3341_s15 = smov 0   ;;  %s3343_s16 = smov 0  }
   0x5   :  { %s3345_s17 = smov 0   ;;  %s3347_s18 = smov 0  }
   0x6 LB: > { %s3362_s19 = sadd.s32 4294967295, %s3296_s18   ;;  %s2585_s20 = sadd.s32 4294967294, %s3296_s18   ;;  %s3296_s18 = sphi %s3347_s18, %s3879_s18   ;;  %s3292_s17 = sphi %s3345_s17, %s3878_s17   ;;  %s3288_s16 = sphi %s3343_s16, %s3877_s16   ;;  %s3284_s15 = sphi %s3341_s15, %s3876_s15  }
   0x7   : > { %p41_p0 = scmp.ne.s32.totalorder %s3288_s16, %s3284_s15  ;;  %p3860_p1 = scmp.eq.s32.totalorder %s3362_s19, 0 }
   0x8   : > { %p134_p3 = scmp.eq.s32.totalorder %s2585_s20, 1  ;;  %p2586_p5 = scmp.ge.s32.totalorder %s3296_s18, 1 }
   0x9   : > { %p3371_p4 = por %p3860_p1, %p41_p0  ;;  %p141_p7 = scmp.lt.s32.totalorder %s3296_s18, 3 }
   0xa   : > { %p3376_p6 = por %p134_p3, %p41_p0  ;;  %s3298_s24 = smov [#allocation7]  }
   0xb   : > { %s3863_s21 = scalar_select %p3371_p4, 1, 0 }
   0xc   : > { %s3864_s22 = scalar_select %p3376_p6, 1, 0 }
   0xd   : > { %p3381_p8 = pnand %p2586_p5, %p141_p7  ;;  %s153_s25 = sshll.u32 %s3298_s24, 4  ;;  %s3385_s25 = int_to_ptr.vmem [resolvable:$true] %s153_s25 }
   0xe   : > { %s3299_s27 = smov [#allocation9]   ;;  %s3140_s5 = scalar_lea.hbm %s3856_s1, 7680 }
   0xf   : > { %p2923_p9 = pneg %p3381_p8  ;;  %s166_s28 = sshll.u32 %s3299_s27, 4  ;;  %s3396_s28 = int_to_ptr.vmem [resolvable:$true] %s166_s28 }
  0x10   : > { %p3141_p12 = scmp.ne.s32.totalorder %s3856_s1, %s3140_s5  ;;  %p3147_p5 = scmp.lt.u32.totalorder %s3140_s5, %s3856_s1 }
  0x11   : > { %p3392_p11 = pnand %p2923_p9, %p3860_p1 }
  0x13   : > { %p3142_p13 = pneg %p3392_p11 }
  0x15   : > { %p3143_p0 = pnand %p3142_p13, %p3141_p12 }
  0x17   : > { %p3144_p3 = pneg %p3143_p0 }
  0x19   : > { %p3149_p7 = pnand %p3147_p5, %p3144_p3 }
  0x1b   : > { %3152 = shalt.err (!%p3149_p7)
}
  0x1c   : > { %s3153_s10 = scalar_lea.vmem %s3385_s25, 7680  ;;  %p3161_p2 = scmp.lt.s32.totalorder %s3385_s25, %s3385_s25 }
  0x1d   : > { %p3154_p9 = scmp.ne.s32.totalorder %s3385_s25, %s3153_s10  ;;  %p3162_p12 = scmp.lt.s32.totalorder %s3153_s10, %s3153_s10 }
  0x1f   : > { %p3156_p10 = pnand %p3154_p9, %p3142_p13  ;;  %p3163_p0 = por %p3162_p12, %p3161_p2 }
  0x21   : > { %p3157_p1 = pneg %p3156_p10 }
  0x23   : > { %p3164_p6 = pnand %p3163_p0, %p3157_p1 }
  0x25   : > { %3167 = shalt.err (!%p3164_p6)
}
  0x26   : > { %s3300_s11 = smov 320   ;;  %s3301_s12 = smov 20  }
  0x27   : > { %2926 = dma.hbm_to_vmem [thread:$0]  (!%p3392_p11), %s3856_s1, 7680, %s3385_s25, [#allocation8], %s3300_s11, %s3300_s11, %s3301_s12  }
  0x28   : > { %s3168_s27 = scalar_lea.hbm %s3857_s2, 3072 }
  0x29   : > { %p3169_p2 = scmp.ne.s32.totalorder %s3857_s2, %s3168_s27  ;;  %p3175_p10 = scmp.lt.u32.totalorder %s3168_s27, %s3857_s2 }
  0x2b   : > { %p3171_p1 = pnand %p3169_p2, %p3142_p13 }
  0x2d   : > { %p3172_p6 = pneg %p3171_p1 }
  0x2f   : > { %p3177_p3 = pnand %p3175_p10, %p3172_p6 }
  0x31   : > { %3180 = shalt.err (!%p3177_p3)
}
  0x32   : > { %s3181_s25 = scalar_lea.vmem %s3396_s28, 3072  ;;  %p3189_p12 = scmp.lt.s32.totalorder %s3396_s28, %s3396_s28 }
  0x33   : > { %p3182_p5 = scmp.ne.s32.totalorder %s3396_s28, %s3181_s25  ;;  %p3190_p0 = scmp.lt.s32.totalorder %s3181_s25, %s3181_s25 }
  0x35   : > { %p3184_p7 = pnand %p3182_p5, %p3142_p13  ;;  %p3191_p2 = por %p3190_p0, %p3189_p12 }
  0x37   : > { %p3185_p9 = pneg %p3184_p7 }
  0x39   : > { %p3192_p1 = pnand %p3191_p2, %p3185_p9 }
  0x3b   : > { %3195 = shalt.err (!%p3192_p1)
}
  0x3c   : > { %s3302_s7 = smov 128   ;;  %s3303_s8 = smov 8  }
  0x3d   : > { %2929 = dma.hbm_to_vmem [thread:$0]  (!%p3392_p11), %s3857_s2, 3072, %s3396_s28, [#allocation8], %s3302_s7, %s3302_s7, %s3303_s8  }
  0x3e   : > { %s3451_s11 = sadd.s32 1, %s3296_s18   ;;  %s28_s13 = sadd.s32 1, %s3292_s17 }
  0x3f   : > { %s25_s12 = ssub.s32 %s3296_s18, %s3451_s11  ;;  %p35_p6 = scmp.ne.s32.totalorder %s3292_s17, %s3288_s16 }
  0x40   : > { %p26_p13 = scmp.eq.s32.totalorder %s25_s12, 0  ;;  %p36_p10 = scmp.eq.s32.totalorder %s3296_s18, 0 }
  0x41   : > { %p3867_p5 = scmp.eq.s32.totalorder %s3362_s19, 1  ;;  %p2940_p9 = scmp.lt.s32.totalorder %s3296_s18, 2 }
  0x42   : > { %s3460_s14 = scalar_select %p26_p13, %s3292_s17, %s28_s13  }
  0x43   : > { %p37_p3 = por %p36_p10, %p35_p6  ;;  %p3464_p7 = por %p3867_p5, %p35_p6 }
  0x44   : > { %s183_s26 = sand.u32 1, %s3292_s17   ;;  %s2717_s28 = sshll.u32 %s3296_s18, 7 }
  0x45   : > { %s3868_s20 = scalar_select %p3464_p7, 1, 0 }
  0x46   : > { %s2590_s24 = sshll.u32 %s183_s26, 3  ;;  %s3474_s30 = scalar_lea.hbm %s3855_s0, %s2717_s28 }
  0x47   : > { %s187_s5 = scalar_lea.vmem [#allocation4], %s2590_s24  ;;  %p3478_p11 = pnand %p2940_p9, %p37_p3 }
  0x48   : > { %s195_s6 = sshll.u32 %s187_s5, 4  ;;  %s184_s7 = scalar_lea.sflag [#allocation5], %s183_s26  ;;  %s3476_s6 = int_to_ptr.vmem [resolvable:$true] %s195_s6 }
  0x49   : > { %s3196_s8 = scalar_lea.hbm %s3474_s30, 128  ;;  %p3198_p0 = pneg %p3478_p11 }
  0x4a   : > { %p3197_p12 = scmp.ne.s32.totalorder %s3474_s30, %s3196_s8  ;;  %s3201_s12 = scalar_lea.hbm %s3855_s0, 256 }
  0x4b   : > { %p3202_p13 = scmp.lt.u32.totalorder %s3474_s30, %s3855_s0  ;;  %p3203_p6 = scmp.lt.u32.totalorder %s3201_s12, %s3196_s8 }
  0x4c   : > { %p3199_p2 = pnand %p3198_p0, %p3197_p12  ;;  %p3205_p3 = scmp.lt.u32.totalorder %s3196_s8, %s3474_s30 }
  0x4d   : > { %p3204_p10 = por %p3203_p6, %p3202_p13 }
  0x4e   : > { %p3200_p1 = pneg %p3199_p2 }
  0x4f   : > { %p3206_p5 = por %p3205_p3, %p3204_p10 }
  0x51   : > { %p3207_p9 = pnand %p3206_p5, %p3200_p1 }
  0x53   : > { %3210 = shalt.err (!%p3207_p9)
}
  0x54   : > { %s3211_s26 = scalar_lea.vmem %s3476_s6, 128  ;;  %s3304_s28 = smov [#allocation4]  }
  0x55   : > { %p3212_p12 = scmp.ne.s32.totalorder %s3476_s6, %s3211_s26  ;;  %s3216_s27 = sshll.u32 %s3304_s28, 4  ;;  %s3217_s27 = int_to_ptr.vmem [resolvable:$false] %s3216_s27 }
  0x56   : > { %s3218_s29 = scalar_lea.vmem %s3217_s27, 256  ;;  %p3219_p4 = scmp.lt.s32.totalorder %s3476_s6, %s3217_s27 }
  0x57   : > { %p3214_p2 = pnand %p3212_p12, %p3198_p0  ;;  %p3220_p13 = scmp.lt.s32.totalorder %s3218_s29, %s3211_s26 }
  0x59   : > { %p3215_p7 = pneg %p3214_p2  ;;  %p3221_p6 = por %p3220_p13, %p3219_p4 }
  0x5b   : > { %p3222_p10 = pnand %p3221_p6, %p3215_p7 }
  0x5d   : > { %3225 = shalt.err (!%p3222_p10)
}
  0x5e   : > { %2933 = dma.hbm_to_vmem [thread:$0]  (!%p3478_p11), %s3474_s30, 128, %s3476_s6, %s184_s7  }
  0x5f   : > { %204 = sbr.rel (%p3381_p8) target bundleno = 1474 (0x5c2), region = 36  ;;  %s3510_s5 = sand.u32 (!%p3381_p8), 1, %s3288_s16  }
  0x60   : > { %s2594_s8 = sshll.u32 (!%p3381_p8), %s3510_s5, 3  ;;  %s207_s9 = scalar_lea.sflag (!%p3381_p8), [#allocation5], %s3510_s5 }
  0x61   : > { %s3514_s10 = scalar_lea.vmem (!%p3381_p8), [#allocation4], %s2594_s8  ;;  %p3870_p4 = scmp.ne.s32.totalorder (!%p3381_p8), %s3863_s21, 0 }
  0x66   : > { %3271 = dma.done.wait (%p3870_p4), %s207_s9, 128  }
  0x67   : > { %3273 = vsyncadd (%p3870_p4), %s207_s9, 4294967168  ;;  %p3871_p7 = scmp.eq.s32.totalorder %s3362_s19, 0 }
  0x69   : > { %3275 = dma.done.wait (%p3871_p7), [#allocation8], 10752   ;;  %p3872_p8 = pmov %p3871_p7 }
  0x6a   : > { %v2992_v0 = vld [vmem:[#allocation7 + $0x4] ss:$20 sps:$4 sm:$0xff]   ;;  %v2994_v1 = vld [vmem:[#allocation7] ss:$20 sps:$4 sm:$0xff]   ;;  %v2997_v3 = vld [vmem:[#allocation7 + $0x28] ss:$20 sps:$4 sm:$0xff]  }
  0x6b   : > { %3277 = vsyncadd (%p3872_p8), [#allocation8], 4294956544  ;;  %639 = vmatprep.subr.bf16.mxu0 %v2992_v0  ;;  %v2995_v2 = vld [vmem:[#allocation7 + $0x2c] ss:$20 sps:$4 sm:$0xff]   ;;  %v2998_v4 = vld [vmem:[#allocation7 + $0x54] ss:$20 sps:$4 sm:$0xff]  }
  0x6c   : > { %640 = vmatpush1.bf16.msra.mxu0 %v2994_v1  ;;  %v3000_v5 = vld [vmem:[#allocation7 + $0x50] ss:$20 sps:$4 sm:$0xff]   ;;  %v3007_v6 = vld [vmem:[#allocation7 + $0xc] ss:$20 sps:$4 sm:$0xff]   ;;  %v3009_v7 = vld [vmem:[#allocation7 + $0x8] ss:$20 sps:$4 sm:$0xff]  }
  0x6d   : > { %641 = vmatprep.subr.bf16.mxu0 %v2995_v2  ;;  %v3001_v8 = vld [vmem:[#allocation7 + $0x7c] ss:$20 sps:$4 sm:$0xff]   ;;  %680 = vmatprep.subr.bf16.mxu1 %v3007_v6  ;;  %v3013_v9 = vld [vmem:[#allocation7 + $0x34] ss:$20 sps:$4 sm:$0xff]   ;;  %v3003_v11 = vld [vmem:[#allocation7 + $0x78] ss:$20 sps:$4 sm:$0xff]  }
  0x6e   : > { %681 = vmatpush1.bf16.msra.mxu1 %v3009_v7  ;;  %v3015_v10 = vld [vmem:[#allocation7 + $0x30] ss:$20 sps:$4 sm:$0xff]   ;;  %v3021_v14 = vld [vmem:[#allocation7 + $0x58] ss:$20 sps:$4 sm:$0xff]   ;;  %v3006_v15 = vld [vmem:[#allocation7 + $0xa0] ss:$20 sps:$4 sm:$0xff]  }
  0x6f   : > { %v3004_v12 = vld [vmem:[#allocation7 + $0xa4] ss:$20 sps:$4 sm:$0xff]   ;;  %682 = vmatprep.subr.bf16.mxu1 %v3013_v9  ;;  %v3019_v13 = vld [vmem:[#allocation7 + $0x5c] ss:$20 sps:$4 sm:$0xff]   ;;  %v3010_v17 = vld [vmem:[#allocation7 + $0xcc] ss:$20 sps:$4 sm:$0xff]  }
  0x70   : > { %642 = vmatpush1.bf16.msra.mxu0 %v2997_v3  ;;  %v3025_v16 = vld [vmem:[#allocation7 + $0x84] ss:$20 sps:$4 sm:$0xff]   ;;  %v3027_v18 = vld [vmem:[#allocation7 + $0x80] ss:$20 sps:$4 sm:$0xff]   ;;  %v3012_v19 = vld [vmem:[#allocation7 + $0xc8] ss:$20 sps:$4 sm:$0xff]  }
  0x71   : > { %643 = vmatprep.subr.bf16.mxu0 %v2998_v4  ;;  %v3031_v20 = vld [vmem:[#allocation7 + $0xac] ss:$20 sps:$4 sm:$0xff]   ;;  %v3016_v21 = vld [vmem:[#allocation7 + $0xf4] ss:$20 sps:$4 sm:$0xff]   ;;  %v3018_v23 = vld [vmem:[#allocation7 + $0xf0] ss:$20 sps:$4 sm:$0xff]  }
  0x72   : > { %683 = vmatpush1.bf16.msra.mxu1 %v3015_v10  ;;  %v3033_v22 = vld [vmem:[#allocation7 + $0xa8] ss:$20 sps:$4 sm:$0xff]   ;;  %v3024_v26 = vld [vmem:[#allocation7 + $0x118] ss:$20 sps:$4 sm:$0xff]   ;;  %v3039_v27 = vld [vmem:[#allocation7 + $0xd0] ss:$20 sps:$4 sm:$0xff]  }
  0x73   : > { %684 = vmatprep.subr.bf16.mxu1 %v3019_v13  ;;  %v3037_v24 = vld [vmem:[#allocation7 + $0xd4] ss:$20 sps:$4 sm:$0xff]   ;;  %v3022_v25 = vld [vmem:[#allocation7 + $0x11c] ss:$20 sps:$4 sm:$0xff]   ;;  %vm635_vm0 = vcmask 523264   ;;  %v3305_v52 = vmov 0  }
  0x74   : > { %644 = vmatpush1.bf16.msra.mxu0 %v3000_v5  ;;  %v244_v28 = vld [vmem:[%s3514_s10] sm:$0xff]  ;;  %v3034_v33 = vld [vmem:[#allocation7 + $0x16c] ss:$20 sps:$4 sm:$0xff]   ;;  %v3306_v0 = vmov 0.0   ;;  %vm761_vm1 = vcmask 130048   ;;  %s3307_s21 = smov 112  }
  0x75   : > { %645 = vmatprep.subr.bf16.mxu0 %v3001_v8  ;;  %v3043_v29 = vld [vmem:[#allocation7 + $0xfc] ss:$20 sps:$4 sm:$0xff]   ;;  %v2599_v30 = vcombine.high %v244_v28, %v244_v28  ;;  %v3028_v31 = vld [vmem:[#allocation7 + $0x144] ss:$20 sps:$4 sm:$0xff]   ;;  %v3030_v32 = vld [vmem:[#allocation7 + $0x140] ss:$20 sps:$4 sm:$0xff]   ;;  %v2598_v49 = vcombine.low %v244_v28, %v244_v28 }
  0x76   : > { %685 = vmatpush1.bf16.msra.mxu1 %v3021_v14  ;;  %v3045_v34 = vld [vmem:[#allocation7 + $0xf8] ss:$20 sps:$4 sm:$0xff]   ;;  %v3051_v36 = vld [vmem:[#allocation7 + $0x120] ss:$20 sps:$4 sm:$0xff]   ;;  %v3036_v37 = vld [vmem:[#allocation7 + $0x168] ss:$20 sps:$4 sm:$0xff]  }
  0x77   : > { %686 = vmatprep.subr.bf16.mxu1 %v3025_v16  ;;  %2660 = vmatprep.mubr.msk.bf16.mxu0 %vm635_vm0, %v2599_v30  ;;  %v3049_v35 = vld [vmem:[#allocation7 + $0x124] ss:$20 sps:$4 sm:$0xff]   ;;  %v3054_v38 = vld [vmem:[#allocation7 + $0x14c] ss:$20 sps:$4 sm:$0xff]   ;;  %v3040_v39 = vld [vmem:[#allocation7 + $0x194] ss:$20 sps:$4 sm:$0xff]  }
  0x78   : > { %646 = vmatpush1.bf16.msra.mxu0 %v3003_v11  ;;  %2661 = vmatprep.mubr.msk.bf16.mxu1 %vm635_vm0, %v2599_v30  ;;  %v3056_v40 = vld [vmem:[#allocation7 + $0x148] ss:$20 sps:$4 sm:$0xff]   ;;  %v3042_v41 = vld [vmem:[#allocation7 + $0x190] ss:$20 sps:$4 sm:$0xff]   ;;  %v3048_v45 = vld [vmem:[#allocation7 + $0x1b8] ss:$20 sps:$4 sm:$0xff]  }
  0x79   : > { %647 = vmatprep.subr.bf16.mxu0 %v3004_v12  ;;  %v3057_v42 = vld [vmem:[#allocation7 + $0x174] ss:$20 sps:$4 sm:$0xff]   ;;  %v3046_v43 = vld [vmem:[#allocation7 + $0x1bc] ss:$20 sps:$4 sm:$0xff]   ;;  %v3062_v47 = vld [vmem:[#allocation7 + $0x198] ss:$20 sps:$4 sm:$0xff]  }
  0x7a   : > { %687 = vmatpush1.bf16.msra.mxu1 %v3027_v18  ;;  %v3059_v44 = vld [vmem:[#allocation7 + $0x170] ss:$20 sps:$4 sm:$0xff]   ;;  %v3065_v50 = vld [vmem:[#allocation7 + $0x1c0] ss:$20 sps:$4 sm:$0xff]   ;;  %v3067_v53 = vld [vmem:[#allocation7 + $0x38] ss:$20 sps:$4 sm:$0xff]  }
  0x7b   : > { %688 = vmatprep.subr.bf16.mxu1 %v3031_v20  ;;  %v3060_v46 = vld [vmem:[#allocation7 + $0x19c] ss:$20 sps:$4 sm:$0xff]   ;;  %v3063_v48 = vld [vmem:[#allocation7 + $0x1c4] ss:$20 sps:$4 sm:$0xff]   ;;  %v3068_v54 = vld [vmem:[#allocation7 + $0x60] ss:$20 sps:$4 sm:$0xff]  }
  0x7c   : > { %648 = vmatpush1.bf16.msra.mxu0 %v3006_v15  ;;  %v3066_v51 = vld [vmem:[#allocation7 + $0x10] ss:$20 sps:$4 sm:$0xff]   ;;  %v3069_v55 = vld [vmem:[#allocation7 + $0x88] ss:$20 sps:$4 sm:$0xff]   ;;  %v3071_v57 = vld [vmem:[#allocation7 + $0xd8] ss:$20 sps:$4 sm:$0xff]  }
  0x7d   : > { %649 = vmatprep.subr.bf16.mxu0 %v3010_v17  ;;  %v3070_v56 = vld [vmem:[#allocation7 + $0xb0] ss:$20 sps:$4 sm:$0xff]   ;;  %v3072_v58 = vld [vmem:[#allocation7 + $0x100] ss:$20 sps:$4 sm:$0xff]   ;;  %v3073_v59 = vld [vmem:[#allocation7 + $0x128] ss:$20 sps:$4 sm:$0xff]  }
  0x7e   : > { %689 = vmatpush1.bf16.msra.mxu1 %v3033_v22  ;;  %v3074_v60 = vld [vmem:[#allocation7 + $0x150] ss:$20 sps:$4 sm:$0xff]   ;;  %v3075_v61 = vld [vmem:[#allocation7 + $0x178] ss:$20 sps:$4 sm:$0xff]   ;;  %v3076_v62 = vld [vmem:[#allocation7 + $0x1a0] ss:$20 sps:$4 sm:$0xff]  }
  0x7f   : > { %690 = vmatprep.subr.bf16.mxu1 %v3037_v24  ;;  %v3077_v63 = vld [vmem:[#allocation7 + $0x1c8] ss:$20 sps:$4 sm:$0xff]   ;;  %s3308_s23 = smov 64   ;;  %s3309_s30 = smov 32   ;;  %vm3311_vm2 = vmmov 0   ;;  %vm1666_vm3 = vcmask 1043456  }
  0x80   : > { %650 = vmatpush1.bf16.msra.mxu0 %v3012_v19  ;;  %s3310_s6 = smov 48   ;;  %s3312_s25 = smov 16   ;;  %vm1555_vm4 = vcmask 64512   ;;  %vm2221_vm5 = vcmask 261248   ;;  %vm2227_vm6 = vcmask 392448   ;;  %vm2233_vm7 = vcmask 523648  }
  0x81   : > { %651 = vmatprep.subr.bf16.mxu0 %v3016_v21  ;;  %s3313_s7 = smov 96   ;;  %s3314_s12 = smov 80   ;;  %vm2239_vm8 = vcmask 654848   ;;  %vm2245_vm9 = vcmask 786048   ;;  %vm2251_vm10 = vcmask 917248   ;;  %vm2257_vm11 = vcmask 1048448  }
  0x82   : > { %691 = vmatpush1.bf16.msra.mxu1 %v3039_v27  ;;  %s2597_s13 = sshll.u32 %s3510_s5, 4  ;;  %s2718_s28 = sshll.u32 %s3362_s19, 8 }
  0x83   : > { %692 = vmatprep.subr.bf16.mxu1 %v3043_v29  ;;  %s242_s27 = scalar_lea.vmem [#allocation10], %s2597_s13  ;;  %s3810_s10 = scalar_lea.hbm %s3859_s4, %s2718_s28 }
  0x84   : > { %652 = vmatpush1.bf16.msra.mxu0 %v3018_v23  ;;  %s2496_s29 = sshll.u32 %s242_s27, 4  ;;  %s2482_s19 = scalar_lea.sflag [#allocation6], %s3510_s5  ;;  %s3812_s29 = int_to_ptr.vmem [resolvable:$true] %s2496_s29 }
  0x85   : > { %653 = vmatprep.subr.bf16.mxu0 %v3022_v25  ;;  %p3873_p0 = scmp.ne.s32.totalorder %s3868_s20, 0 }
  0x86   : > { %693 = vmatpush1.bf16.msra.mxu1 %v3045_v34 }
  0x87   : > { %694 = vmatprep.subr.bf16.mxu1 %v3049_v35 }
  0x88   : > { %654 = vmatpush1.bf16.msra.mxu0 %v3024_v26 }
  0x89   : > { %655 = vmatprep.subr.bf16.mxu0 %v3028_v31 }
  0x8a   : > { %695 = vmatpush1.bf16.msra.mxu1 %v3051_v36 }
  0x8b   : > { %696 = vmatprep.subr.bf16.mxu1 %v3054_v38 }
  0x8c   : > { %656 = vmatpush1.bf16.msra.mxu0 %v3030_v32 }
  0x8d   : > { %657 = vmatprep.subr.bf16.mxu0 %v3034_v33 }
  0x8e   : > { %697 = vmatpush1.bf16.msra.mxu1 %v3056_v40 }
  0x8f   : > { %698 = vmatprep.subr.bf16.mxu1 %v3057_v42 }
  0x90   : > { %658 = vmatpush1.bf16.msra.mxu0 %v3036_v37 }
  0x91   : > { %659 = vmatprep.subr.bf16.mxu0 %v3040_v39 }
  0x92   : > { %699 = vmatpush1.bf16.msra.mxu1 %v3059_v44 }
  0x93   : > { %700 = vmatprep.subr.bf16.mxu1 %v3060_v46 }
  0x94   : > { %660 = vmatpush1.bf16.msra.mxu0 %v3042_v41 }
  0x95   : > { %661 = vmatprep.subr.bf16.mxu0 %v3046_v43 }
  0x96   : > { %701 = vmatpush1.bf16.msra.mxu1 %v3062_v47 }
  0x97   : > { %702 = vmatprep.subr.bf16.mxu1 %v3063_v48 }
  0x98   : > { %662 = vmatpush1.bf16.msra.mxu0 %v3048_v45 }
  0x99   : > { %721 = vmatprep.subr.bf16.mxu0 %v3305_v52 }
  0x9a   : > { %703 = vmatpush1.bf16.msra.mxu1 %v3065_v50 }
  0x9b   : > { %672 = vmatmul.mubr.bf16.vlgmr.msra.gmra.mrb[0].mxu0 %v2598_v49  ;;  %2767 = vmatprep.subr.bf16.mxu1 %v3306_v0 }
  0x9c   : > { %2662 = vmatprep.mubr.msk.bf16.mxu0 %vm635_vm0, %v2599_v30  ;;  %722 = vmatpush1.bf16.msra.mxu0 %v3066_v51 }
  0x9d   : > { %713 = vmatmul.mubr.bf16.vlgmr.msra.gmra.mrb[0].mxu1 %v2598_v49  ;;  %723 = vmatprep.subr.bf16.mxu0 %v3305_v52 }
  0x9e   : > { %2769 = vmatprep.mubr.msk.bf16.mxu1 %vm3311_vm2, %v3306_v0 }
  0xa0   : > { %724 = vmatpush1.bf16.msra.mxu0 %v3067_v53 }
  0xa1   : > { %725 = vmatprep.subr.bf16.mxu0 %v3305_v52 }
  0xa4   : > { %726 = vmatpush1.bf16.msra.mxu0 %v3068_v54 }
  0xa5   : > { %727 = vmatprep.subr.bf16.mxu0 %v3305_v52 }
  0xa8   : > { %728 = vmatpush1.bf16.msra.mxu0 %v3069_v55 }
  0xa9   : > { %729 = vmatprep.subr.bf16.mxu0 %v3305_v52 }
  0xac   : > { %730 = vmatpush1.bf16.msra.mxu0 %v3070_v56 }
  0xad   : > { %731 = vmatprep.subr.bf16.mxu0 %v3305_v52 }
  0xb0   : > { %732 = vmatpush1.bf16.msra.mxu0 %v3071_v57 }
  0xb1   : > { %733 = vmatprep.subr.bf16.mxu0 %v3305_v52 }
  0xb4   : > { %734 = vmatpush1.bf16.msra.mxu0 %v3072_v58 }
  0xb5   : > { %735 = vmatprep.subr.bf16.mxu0 %v3305_v52 }
  0xb8   : > { %736 = vmatpush1.bf16.msra.mxu0 %v3073_v59 }
  0xb9   : > { %737 = vmatprep.subr.bf16.mxu0 %v3305_v52 }
  0xbc   : > { %738 = vmatpush1.bf16.msra.mxu0 %v3074_v60 }
  0xbd   : > { %739 = vmatprep.subr.bf16.mxu0 %v3305_v52 }
  0xc0   : > { %740 = vmatpush1.bf16.msra.mxu0 %v3075_v61 }
  0xc1   : > { %741 = vmatprep.subr.bf16.mxu0 %v3305_v52 }
  0xc4   : > { %742 = vmatpush1.bf16.msra.mxu0 %v3076_v62 }
  0xc5   : > { %743 = vmatprep.subr.bf16.mxu0 %v3305_v52 }
  0xc8   : > { %744 = vmatpush1.bf16.msra.mxu0 %v3077_v63 }
  0xc9   : > { %2839 = vmatprep.subr.bf16.mxu0 %v3306_v0 }
  0xcb   : > { %754 = vmatmul.mubr.bf16.vlgmr.msra.gmra.mrb[4].mxu0 %v2598_v49 }
  0xcc   : > { %2841 = vmatprep.mubr.msk.bf16.mxu0 %vm3311_vm2, %v3306_v0 }
 0x16e   : > { %v673_v1 = vpop.f32.mrb[0].mxu0 }
 0x16f   : > { %762 = vst.msk [vmem:[#allocation2] sm:$0xff] %vm761_vm1, %v673_v1  ;;  %764 = vrot.lane.b32.xlu1 %v673_v1, %s3307_s21  ;;  %v675_v2 = vpop.f32.mrb[1].mxu0 }
 0x170   : > { %800 = vst.msk [vmem:[#allocation2 + $0x40] sm:$0xff] %vm761_vm1, %v675_v2  ;;  %817 = vrot.lane.b32.xlu0 %v675_v2, %s3308_s23  ;;  %v677_v3 = vpop.f32.mrb[2].mxu0  ;;  %v714_v5 = vpop.f32.mrb[0].mxu1 }
 0x171   : > { %v678_v4 = vpop.f32.mrb[3].mxu0  ;;  %838 = vst.msk [vmem:[#allocation2 + $0x80] sm:$0xff] %vm761_vm1, %v714_v5  ;;  %v716_v6 = vpop.f32.mrb[1].mxu1 }
 0x172   : > { %876 = vst.msk [vmem:[#allocation2 + $0xc0] sm:$0xff] %vm761_vm1, %v716_v6  ;;  %v718_v7 = vpop.f32.mrb[2].mxu1 }
 0x173   : > { %827 = vrot.lane.b32.xlu1 %v675_v2, %s3309_s30  ;;  %v719_v8 = vpop.f32.mrb[3].mxu1 }
 0x174   : > { %822 = vrot.lane.b32.xlu0 %v675_v2, %s3310_s6 }
 0x176   : > { %v931_v24 = vld [vmem:[#allocation2] sm:$0xff] }
 0x177   : > { %832 = vrot.lane.b32.xlu1 %v675_v2, %s3312_s25  ;;  %v967_v28 = vpack.c.bf16 %v931_v24, %v931_v24 }
 0x178   : > { %769 = vrot.lane.b32.xlu0 %v673_v1, %s3313_s7  ;;  %v947_v50 = vld [vmem:[#allocation2 + $0x80] sm:$0xff] }
 0x179   : > { %v955_v9 = vld [vmem:[#allocation2 + $0xc0] sm:$0xff]  ;;  %v983_v53 = vpack.c.bf16 %v947_v50, %v947_v50 }
 0x17a   : > { %v991_v10 = vpack.c.bf16 %v955_v9, %v955_v9 }
 0x17b   : > { %779 = vrot.lane.b32.xlu1 %v673_v1, %s3308_s23  ;;  %v1191_v58 = vsel %vm761_vm1, %v983_v53, 0 }
 0x17c   : > { %774 = vrot.lane.b32.xlu0 %v673_v1, %s3314_s12  ;;  %v1668_v11 = vsel %vm1666_vm3, %v991_v10, 0 }
 0x17d   : > { %2840 = vmatpush3.bf16.msra.mxu0 %v1668_v11 }
 0x17e   : > { %2851 = vmatprep.subr.bf16.mxu0 %v3306_v0 }
 0x17f   : > { %784 = vrot.lane.b32.xlu1 %v673_v1, %s3310_s6 }
 0x180   : > { %840 = vrot.lane.b32.xlu0 %v714_v5, %s3307_s21 }
 0x183   : > { %789 = vrot.lane.b32.xlu1 %v673_v1, %s3309_s30 }
 0x184   : > { %845 = vrot.lane.b32.xlu0 %v714_v5, %s3313_s7 }
 0x187   : > { %794 = vrot.lane.b32.xlu1 %v673_v1, %s3312_s25 }
 0x188   : > { %850 = vrot.lane.b32.xlu0 %v714_v5, %s3314_s12 }
 0x18b   : > { %860 = vrot.lane.b32.xlu1 %v714_v5, %s3310_s6 }
 0x18c   : > { %855 = vrot.lane.b32.xlu0 %v714_v5, %s3308_s23 }
 0x18f   : > { %865 = vrot.lane.b32.xlu1 %v714_v5, %s3309_s30 }
 0x190   : > { %802 = vrot.lane.b32.xlu0 %v675_v2, %s3307_s21 }
 0x193   : > { %870 = vrot.lane.b32.xlu1 %v714_v5, %s3312_s25 }
 0x194   : > { %807 = vrot.lane.b32.xlu0 %v675_v2, %s3313_s7 }
 0x197   : > { %878 = vrot.lane.b32.xlu1 %v716_v6, %s3307_s21 }
 0x198   : > { %812 = vrot.lane.b32.xlu0 %v675_v2, %s3314_s12 }
 0x19b   : > { %888 = vrot.lane.b32.xlu1 %v716_v6, %s3314_s12 }
 0x19c   : > { %883 = vrot.lane.b32.xlu0 %v716_v6, %s3313_s7 }
 0x19f   : > { %898 = vrot.lane.b32.xlu1 %v716_v6, %s3310_s6 }
 0x1a0   : > { %893 = vrot.lane.b32.xlu0 %v716_v6, %s3308_s23 }
 0x1a3   : > { %908 = vrot.lane.b32.xlu1 %v716_v6, %s3312_s25 }
 0x1a4   : > { %903 = vrot.lane.b32.xlu0 %v716_v6, %s3309_s30 }
 0x1e1   : > { %v765_v12 = vpop.permute.xlu1 %764 }
 0x1e2   : > { %768 = vst.msk [vmem:[#allocation2 + $0x8] sm:$0xff] %vm761_vm1, %v765_v12  ;;  %v818_v13 = vpop.permute.xlu0 %817 }
 0x1e3   : > { %821 = vst.msk [vmem:[#allocation2 + $0x60] sm:$0xff] %vm761_vm1, %v818_v13 }
 0x1e5   : > { %v828_v14 = vpop.permute.xlu1 %827 }
 0x1e6   : > { %831 = vst.msk [vmem:[#allocation2 + $0x70] sm:$0xff] %vm761_vm1, %v828_v14  ;;  %v823_v15 = vpop.permute.xlu0 %822 }
 0x1e7   : > { %826 = vst.msk [vmem:[#allocation2 + $0x68] sm:$0xff] %vm761_vm1, %v823_v15 }
 0x1e9   : > { %v833_v16 = vpop.permute.xlu1 %832  ;;  %v932_v33 = vld [vmem:[#allocation2 + $0x8] sm:$0xff] }
 0x1ea   : > { %836 = vst.msk [vmem:[#allocation2 + $0x78] sm:$0xff] %vm761_vm1, %v833_v16  ;;  %v770_v17 = vpop.permute.xlu0 %769  ;;  %v943_v18 = vld [vmem:[#allocation2 + $0x60] sm:$0xff]  ;;  %v968_v37 = vpack.c.bf16 %v932_v33, %v932_v33 }
 0x1eb   : > { %773 = vst.msk [vmem:[#allocation2 + $0x10] sm:$0xff] %vm761_vm1, %v770_v17  ;;  %v979_v19 = vpack.c.bf16 %v943_v18, %v943_v18 }
 0x1ed   : > { %v780_v20 = vpop.permute.xlu1 %779  ;;  %v1007_v21 = vsel %vm761_vm1, %v979_v19, 0  ;;  %v945_v32 = vld [vmem:[#allocation2 + $0x70] sm:$0xff] }
 0x1ee   : > { %783 = vst.msk [vmem:[#allocation2 + $0x20] sm:$0xff] %vm761_vm1, %v780_v20  ;;  %2768 = vmatpush3.bf16.xpose.msra.mxu1 %v1007_v21  ;;  %v775_v22 = vpop.permute.xlu0 %774  ;;  %v944_v23 = vld [vmem:[#allocation2 + $0x68] sm:$0xff]  ;;  %v981_v35 = vpack.c.bf16 %v945_v32, %v945_v32  ;;  %v939_v21 = vld [vmem:[#allocation2 + $0x40] sm:$0xff] }
 0x1ef   : > { %778 = vst.msk [vmem:[#allocation2 + $0x18] sm:$0xff] %vm761_vm1, %v775_v22  ;;  %2773 = vmatprep.subr.bf16.mxu1 %v3306_v0  ;;  %v980_v26 = vpack.c.bf16 %v944_v23, %v944_v23  ;;  %v975_v23 = vpack.c.bf16 %v939_v21, %v939_v21 }
 0x1f0   : > { %v1099_v39 = vsel %vm761_vm1, %v981_v35, 0 }
 0x1f1   : > { %v785_v25 = vpop.permute.xlu1 %784  ;;  %v1053_v30 = vsel %vm761_vm1, %v980_v26, 0  ;;  %v946_v41 = vld [vmem:[#allocation2 + $0x78] sm:$0xff] }
 0x1f2   : > { %788 = vst.msk [vmem:[#allocation2 + $0x28] sm:$0xff] %vm761_vm1, %v785_v25  ;;  %v841_v27 = vpop.permute.xlu0 %840  ;;  %v933_v42 = vld [vmem:[#allocation2 + $0x10] sm:$0xff]  ;;  %v982_v44 = vpack.c.bf16 %v946_v41, %v946_v41 }
 0x1f3   : > { %844 = vst.msk [vmem:[#allocation2 + $0x88] sm:$0xff] %vm761_vm1, %v841_v27  ;;  %v969_v46 = vpack.c.bf16 %v933_v42, %v933_v42 }
 0x1f4   : > { %v1145_v48 = vsel %vm761_vm1, %v982_v44, 0 }
 0x1f5   : > { %v790_v29 = vpop.permute.xlu1 %789  ;;  %2770 = vmatmul.mubr.msk.bf16.vlgmr.msra.gmra.mrb[4].mxu1 %vm761_vm1, %v967_v28  ;;  %v935_v61 = vld [vmem:[#allocation2 + $0x20] sm:$0xff] }
 0x1f6   : > { %793 = vst.msk [vmem:[#allocation2 + $0x30] sm:$0xff] %vm761_vm1, %v790_v29  ;;  %2774 = vmatpush3.bf16.xpose.msra.mxu1 %v1053_v30  ;;  %v846_v31 = vpop.permute.xlu0 %845  ;;  %2775 = vmatprep.mubr.msk.bf16.mxu1 %vm3311_vm2, %v3306_v0  ;;  %v934_v51 = vld [vmem:[#allocation2 + $0x18] sm:$0xff]  ;;  %v971_v1 = vpack.c.bf16 %v935_v61, %v935_v61 }
 0x1f7   : > { %849 = vst.msk [vmem:[#allocation2 + $0x90] sm:$0xff] %vm761_vm1, %v846_v31  ;;  %2779 = vmatprep.subr.bf16.mxu1 %v3306_v0  ;;  %v970_v55 = vpack.c.bf16 %v934_v51, %v934_v51 }
 0x1f9   : > { %v795_v34 = vpop.permute.xlu1 %794  ;;  %v936_v6 = vld [vmem:[#allocation2 + $0x28] sm:$0xff] }
 0x1fa   : > { %798 = vst.msk [vmem:[#allocation2 + $0x38] sm:$0xff] %vm761_vm1, %v795_v34  ;;  %v851_v36 = vpop.permute.xlu0 %850  ;;  %v948_v56 = vld [vmem:[#allocation2 + $0x88] sm:$0xff]  ;;  %v972_v8 = vpack.c.bf16 %v936_v6, %v936_v6 }
 0x1fb   : > { %854 = vst.msk [vmem:[#allocation2 + $0x98] sm:$0xff] %vm761_vm1, %v851_v36  ;;  %v984_v60 = vpack.c.bf16 %v948_v56, %v948_v56 }
 0x1fd   : > { %v861_v38 = vpop.permute.xlu1 %860  ;;  %2776 = vmatmul.mubr.msk.bf16.vlgmr.msra.gmra.mrb[8].mxu1 %vm761_vm1, %v968_v37  ;;  %v1237_v2 = vsel %vm761_vm1, %v984_v60, 0  ;;  %v937_v11 = vld [vmem:[#allocation2 + $0x30] sm:$0xff] }
 0x1fe   : > { %864 = vst.msk [vmem:[#allocation2 + $0xa8] sm:$0xff] %vm761_vm1, %v861_v38  ;;  %2780 = vmatpush3.bf16.xpose.msra.mxu1 %v1099_v39  ;;  %v856_v40 = vpop.permute.xlu0 %855  ;;  %2781 = vmatprep.mubr.msk.bf16.mxu1 %vm3311_vm2, %v3306_v0  ;;  %v949_v5 = vld [vmem:[#allocation2 + $0x90] sm:$0xff]  ;;  %v973_v13 = vpack.c.bf16 %v937_v11, %v937_v11 }
 0x1ff   : > { %859 = vst.msk [vmem:[#allocation2 + $0xa0] sm:$0xff] %vm761_vm1, %v856_v40  ;;  %2785 = vmatprep.subr.bf16.mxu1 %v3306_v0  ;;  %v985_v7 = vpack.c.bf16 %v949_v5, %v949_v5  ;;  %v755_v40 = vpop.f32.mrb[4].mxu0 }
 0x200   : > { %914 = vst.msk [vmem:[#allocation2 + $0x100] sm:$0xff] %vm761_vm1, %v755_v40  ;;  %916 = vrot.lane.b32.xlu0 %v755_v40, %s3307_s21  ;;  %v757_v41 = vpop.f32.mrb[5].mxu0  ;;  %921 = vrot.lane.b32.xlu1 %v755_v40, %s3313_s7 }
 0x201   : > { %v866_v43 = vpop.permute.xlu1 %865  ;;  %v1283_v9 = vsel %vm761_vm1, %v985_v7, 0  ;;  %v938_v16 = vld [vmem:[#allocation2 + $0x38] sm:$0xff]  ;;  %v758_v42 = vpop.f32.mrb[6].mxu0 }
 0x202   : > { %869 = vst.msk [vmem:[#allocation2 + $0xb0] sm:$0xff] %vm761_vm1, %v866_v43  ;;  %v803_v45 = vpop.permute.xlu0 %802  ;;  %v950_v10 = vld [vmem:[#allocation2 + $0x98] sm:$0xff]  ;;  %v974_v18 = vpack.c.bf16 %v938_v16, %v938_v16  ;;  %v759_v43 = vpop.f32.mrb[7].mxu0 }
 0x203   : > { %806 = vst.msk [vmem:[#allocation2 + $0x48] sm:$0xff] %vm761_vm1, %v803_v45  ;;  %v986_v12 = vpack.c.bf16 %v950_v10, %v950_v10 }
 0x204   : > { %926 = vrot.lane.b32.xlu0 %v755_v40, %s3314_s12 }
 0x205   : > { %v871_v47 = vpop.permute.xlu1 %870  ;;  %2782 = vmatmul.mubr.msk.bf16.vlgmr.msra.gmra.mrb[12].mxu1 %vm761_vm1, %v969_v46  ;;  %v1329_v14 = vsel %vm761_vm1, %v986_v12, 0  ;;  %v952_v20 = vld [vmem:[#allocation2 + $0xa8] sm:$0xff] }
 0x206   : > { %874 = vst.msk [vmem:[#allocation2 + $0xb8] sm:$0xff] %vm761_vm1, %v871_v47  ;;  %2786 = vmatpush3.bf16.xpose.msra.mxu1 %v1145_v48  ;;  %v808_v49 = vpop.permute.xlu0 %807  ;;  %2787 = vmatprep.mubr.msk.bf16.mxu1 %vm3311_vm2, %v3306_v0  ;;  %v951_v15 = vld [vmem:[#allocation2 + $0xa0] sm:$0xff]  ;;  %v988_v22 = vpack.c.bf16 %v952_v20, %v952_v20 }
 0x207   : > { %811 = vst.msk [vmem:[#allocation2 + $0x50] sm:$0xff] %vm761_vm1, %v808_v49  ;;  %2791 = vmatprep.subr.bf16.mxu1 %v3306_v0  ;;  %v987_v17 = vpack.c.bf16 %v951_v15, %v951_v15 }
 0x208   : > { %v1421_v24 = vsel %vm761_vm1, %v988_v22, 0 }
 0x209   : > { %v879_v52 = vpop.permute.xlu1 %878  ;;  %v1375_v19 = vsel %vm761_vm1, %v987_v17, 0  ;;  %v953_v25 = vld [vmem:[#allocation2 + $0xb0] sm:$0xff] }
 0x20a   : > { %882 = vst.msk [vmem:[#allocation2 + $0xc8] sm:$0xff] %vm761_vm1, %v879_v52  ;;  %v813_v54 = vpop.permute.xlu0 %812  ;;  %v940_v26 = vld [vmem:[#allocation2 + $0x48] sm:$0xff]  ;;  %v989_v27 = vpack.c.bf16 %v953_v25, %v953_v25 }
 0x20b   : > { %816 = vst.msk [vmem:[#allocation2 + $0x58] sm:$0xff] %vm761_vm1, %v813_v54  ;;  %v976_v28 = vpack.c.bf16 %v940_v26, %v940_v26 }
 0x20c   : > { %v1467_v29 = vsel %vm761_vm1, %v989_v27, 0 }
 0x20d   : > { %v889_v57 = vpop.permute.xlu1 %888  ;;  %2788 = vmatmul.mubr.msk.bf16.vlgmr.msra.gmra.mrb[16].mxu1 %vm761_vm1, %v970_v55  ;;  %v954_v30 = vld [vmem:[#allocation2 + $0xb8] sm:$0xff] }
 0x20e   : > { %892 = vst.msk [vmem:[#allocation2 + $0xd8] sm:$0xff] %vm761_vm1, %v889_v57  ;;  %2792 = vmatpush3.bf16.xpose.msra.mxu1 %v1191_v58  ;;  %v884_v59 = vpop.permute.xlu0 %883  ;;  %2793 = vmatprep.mubr.msk.bf16.mxu1 %vm3311_vm2, %v3306_v0  ;;  %v941_v31 = vld [vmem:[#allocation2 + $0x50] sm:$0xff]  ;;  %v990_v32 = vpack.c.bf16 %v954_v30, %v954_v30 }
 0x20f   : > { %887 = vst.msk [vmem:[#allocation2 + $0xd0] sm:$0xff] %vm761_vm1, %v884_v59  ;;  %2797 = vmatprep.subr.bf16.mxu1 %v3306_v0  ;;  %v977_v33 = vpack.c.bf16 %v941_v31, %v941_v31 }
 0x210   : > { %v1513_v34 = vsel %vm761_vm1, %v990_v32, 0 }
 0x211   : > { %v899_v62 = vpop.permute.xlu1 %898  ;;  %v956_v35 = vld [vmem:[#allocation2 + $0xc8] sm:$0xff] }
 0x212   : > { %902 = vst.msk [vmem:[#allocation2 + $0xe8] sm:$0xff] %vm761_vm1, %v899_v62  ;;  %v894_v63 = vpop.permute.xlu0 %893  ;;  %v942_v36 = vld [vmem:[#allocation2 + $0x58] sm:$0xff]  ;;  %v992_v37 = vpack.c.bf16 %v956_v35, %v956_v35 }
 0x213   : > { %897 = vst.msk [vmem:[#allocation2 + $0xe0] sm:$0xff] %vm761_vm1, %v894_v63  ;;  %v978_v38 = vpack.c.bf16 %v942_v36, %v942_v36 }
 0x214   : > { %v1714_v39 = vsel %vm1666_vm3, %v992_v37, 0 }
 0x215   : > { %v909_v3 = vpop.permute.xlu1 %908  ;;  %2794 = vmatmul.mubr.msk.bf16.vlgmr.msra.gmra.mrb[20].mxu1 %vm761_vm1, %v971_v1 }
 0x216   : > { %912 = vst.msk [vmem:[#allocation2 + $0xf8] sm:$0xff] %vm761_vm1, %v909_v3  ;;  %2798 = vmatpush3.bf16.xpose.msra.mxu1 %v1237_v2  ;;  %v904_v4 = vpop.permute.xlu0 %903  ;;  %2799 = vmatprep.mubr.msk.bf16.mxu1 %vm3311_vm2, %v3306_v0 }
 0x217   : > { %907 = vst.msk [vmem:[#allocation2 + $0xf0] sm:$0xff] %vm761_vm1, %v904_v4  ;;  %2803 = vmatprep.subr.bf16.mxu1 %v3306_v0 }
 0x21d   : > { %2800 = vmatmul.mubr.msk.bf16.vlgmr.msra.gmra.mrb[24].mxu1 %vm761_vm1, %v972_v8 }
 0x21e   : > { %2804 = vmatpush3.bf16.xpose.msra.mxu1 %v1283_v9  ;;  %2805 = vmatprep.mubr.msk.bf16.mxu1 %vm3311_vm2, %v3306_v0 }
 0x21f   : > { %2809 = vmatprep.subr.bf16.mxu1 %v3306_v0 }
 0x225   : > { %2806 = vmatmul.mubr.msk.bf16.vlgmr.msra.gmra.mrb[28].mxu1 %vm761_vm1, %v973_v13 }
 0x226   : > { %2810 = vmatpush3.bf16.xpose.msra.mxu1 %v1329_v14  ;;  %2811 = vmatprep.mubr.msk.bf16.mxu1 %vm3311_vm2, %v3306_v0 }
 0x227   : > { %2815 = vmatprep.subr.bf16.mxu1 %v3306_v0 }
 0x22d   : > { %2812 = vmatmul.mubr.msk.bf16.vlgmr.msra.gmra.mrb[32].mxu1 %vm761_vm1, %v974_v18 }
 0x22e   : > { %2816 = vmatpush3.bf16.xpose.msra.mxu1 %v1375_v19  ;;  %2817 = vmatprep.mubr.msk.bf16.mxu1 %vm3311_vm2, %v3306_v0 }
 0x22f   : > { %2821 = vmatprep.subr.bf16.mxu1 %v3306_v0 }
 0x235   : > { %2818 = vmatmul.mubr.msk.bf16.vlgmr.msra.gmra.mrb[36].mxu1 %vm761_vm1, %v975_v23 }
 0x236   : > { %2822 = vmatpush3.bf16.xpose.msra.mxu1 %v1421_v24  ;;  %2823 = vmatprep.mubr.msk.bf16.mxu1 %vm3311_vm2, %v3306_v0 }
 0x237   : > { %2827 = vmatprep.subr.bf16.mxu1 %v3306_v0 }
 0x23d   : > { %2824 = vmatmul.mubr.msk.bf16.vlgmr.msra.gmra.mrb[40].mxu1 %vm761_vm1, %v976_v28 }
 0x23e   : > { %2828 = vmatpush3.bf16.xpose.msra.mxu1 %v1467_v29  ;;  %2829 = vmatprep.mubr.msk.bf16.mxu1 %vm3311_vm2, %v3306_v0 }
 0x23f   : > { %2833 = vmatprep.subr.bf16.mxu1 %v3306_v0 }
 0x245   : > { %2830 = vmatmul.mubr.msk.bf16.vlgmr.msra.gmra.mrb[44].mxu1 %vm761_vm1, %v977_v33 }
 0x246   : > { %2834 = vmatpush3.bf16.xpose.msra.mxu1 %v1513_v34  ;;  %2835 = vmatprep.mubr.msk.bf16.mxu1 %vm3311_vm2, %v3306_v0 }
 0x247   : > { %2845 = vmatprep.subr.bf16.mxu1 %v3306_v0 }
 0x24d   : > { %2836 = vmatmul.mubr.msk.bf16.vlgmr.msra.gmra.mrb[48].mxu1 %vm761_vm1, %v978_v38 }
 0x24e   : > { %2846 = vmatpush3.bf16.msra.mxu1 %v1714_v39  ;;  %2847 = vmatprep.mubr.msk.bf16.mxu1 %vm3311_vm2, %v3306_v0 }
 0x24f   : > { %2857 = vmatprep.subr.bf16.mxu1 %v3306_v0 }
 0x272   : > { %v917_v61 = vpop.permute.xlu0 %916  ;;  %v922_v6 = vpop.permute.xlu1 %921 }
 0x273   : > { %920 = vst.msk [vmem:[#allocation2 + $0x108] sm:$0xff] %vm761_vm1, %v917_v61  ;;  %925 = vst.msk [vmem:[#allocation2 + $0x110] sm:$0xff] %vm761_vm1, %v922_v6 }
 0x276   : > { %v927_v10 = vpop.permute.xlu0 %926 }
 0x277   : > { %930 = vst.msk [vmem:[#allocation2 + $0x118] sm:$0xff] %vm761_vm1, %v927_v10 }
 0x2c8   : > { %v3662_v44 = vpop.f32.mrb[4].mxu1 }
 0x2c9   : > { %v2771_v45 = vpop.f32.mrb[5].mxu1  ;;  %v1556_v62 = vsel %vm1555_vm4, %v3662_v44, -inf }
 0x2ca   : > { %v1046_v46 = vpop.f32.mrb[6].mxu1 }
 0x2cb   : > { %v2772_v47 = vpop.f32.mrb[7].mxu1 }
 0x2d0   : > { %v3664_v48 = vpop.f32.mrb[8].mxu1 }
 0x2d1   : > { %v2777_v49 = vpop.f32.mrb[9].mxu1  ;;  %v1557_v7 = vsel %vm1555_vm4, %v3664_v48, -inf }
 0x2d2   : > { %v1092_v50 = vpop.f32.mrb[10].mxu1 }
 0x2d3   : > { %v2778_v51 = vpop.f32.mrb[11].mxu1 }
 0x2d8   : > { %v3666_v52 = vpop.f32.mrb[12].mxu1 }
 0x2d9   : > { %v2783_v53 = vpop.f32.mrb[13].mxu1  ;;  %v1558_v15 = vsel %vm1555_vm4, %v3666_v52, -inf }
 0x2da   : > { %v1138_v54 = vpop.f32.mrb[14].mxu1 }
 0x2db   : > { %v2784_v55 = vpop.f32.mrb[15].mxu1 }
 0x2e0   : > { %v3668_v56 = vpop.f32.mrb[16].mxu1 }
 0x2e1   : > { %v2789_v57 = vpop.f32.mrb[17].mxu1  ;;  %v1559_v22 = vsel %vm1555_vm4, %v3668_v56, -inf }
 0x2e2   : > { %v1184_v58 = vpop.f32.mrb[18].mxu1 }
 0x2e3   : > { %v2790_v59 = vpop.f32.mrb[19].mxu1 }
 0x2e8   : > { %v3670_v60 = vpop.f32.mrb[20].mxu1 }
 0x2e9   : > { %v1560_v63 = vsel %vm1555_vm4, %v3670_v60, -inf  ;;  %v2795_v1 = vpop.f32.mrb[21].mxu1 }
 0x2ea   : > { %v1561_v2 = vmax.f32 %v1556_v62, %v1560_v63  ;;  %v1230_v3 = vpop.f32.mrb[22].mxu1 }
 0x2eb   : > { %v2796_v4 = vpop.f32.mrb[23].mxu1 }
 0x2f0   : > { %v3677_v5 = vpop.f32.mrb[24].mxu1 }
 0x2f1   : > { %v1562_v8 = vsel %vm1555_vm4, %v3677_v5, -inf  ;;  %v2801_v9 = vpop.f32.mrb[25].mxu1 }
 0x2f2   : > { %v1563_v11 = vmax.f32 %v1557_v7, %v1562_v8  ;;  %v1276_v12 = vpop.f32.mrb[26].mxu1 }
 0x2f3   : > { %v2802_v13 = vpop.f32.mrb[27].mxu1 }
 0x2f8   : > { %v3685_v14 = vpop.f32.mrb[28].mxu1 }
 0x2f9   : > { %v1564_v16 = vsel %vm1555_vm4, %v3685_v14, -inf  ;;  %v2807_v17 = vpop.f32.mrb[29].mxu1 }
 0x2fa   : > { %v1565_v18 = vmax.f32 %v1558_v15, %v1564_v16  ;;  %v1322_v19 = vpop.f32.mrb[30].mxu1 }
 0x2fb   : > { %v2808_v20 = vpop.f32.mrb[31].mxu1 }
 0x300   : > { %v1365_v21 = vpop.f32.mrb[32].mxu1 }
 0x301   : > { %v1566_v23 = vsel %vm1555_vm4, %v1365_v21, -inf  ;;  %v2813_v24 = vpop.f32.mrb[33].mxu1 }
 0x302   : > { %v1567_v25 = vmax.f32 %v1559_v22, %v1566_v23  ;;  %v1368_v26 = vpop.f32.mrb[34].mxu1 }
 0x303   : > { %v2814_v27 = vpop.f32.mrb[35].mxu1 }
 0x308   : > { %v1411_v28 = vpop.f32.mrb[36].mxu1 }
 0x309   : > { %v1568_v29 = vsel %vm1555_vm4, %v1411_v28, -inf  ;;  %v2819_v30 = vpop.f32.mrb[37].mxu1 }
 0x30a   : > { %v1569_v31 = vmax.f32 %v1561_v2, %v1568_v29  ;;  %v1414_v32 = vpop.f32.mrb[38].mxu1 }
 0x30b   : > { %v2820_v33 = vpop.f32.mrb[39].mxu1 }
 0x310   : > { %v1457_v34 = vpop.f32.mrb[40].mxu1 }
 0x311   : > { %v1570_v35 = vsel %vm1555_vm4, %v1457_v34, -inf  ;;  %v2825_v36 = vpop.f32.mrb[41].mxu1 }
 0x312   : > { %v1571_v37 = vmax.f32 %v1563_v11, %v1570_v35  ;;  %v1460_v38 = vpop.f32.mrb[42].mxu1 }
 0x313   : > { %v2826_v39 = vpop.f32.mrb[43].mxu1 }
 0x314   : > { %v1576_v40 = vmax.f32 %v1569_v31, %v1571_v37 }
 0x318   : > { %v1503_v41 = vpop.f32.mrb[44].mxu1 }
 0x319   : > { %v1572_v42 = vsel %vm1555_vm4, %v1503_v41, -inf  ;;  %v2831_v43 = vpop.f32.mrb[45].mxu1 }
 0x31a   : > { %v1573_v45 = vmax.f32 %v1565_v18, %v1572_v42  ;;  %v1506_v46 = vpop.f32.mrb[46].mxu1 }
 0x31b   : > { %v2832_v47 = vpop.f32.mrb[47].mxu1 }
 0x320   : > { %v1549_v49 = vpop.f32.mrb[48].mxu1 }
 0x321   : > { %v1574_v50 = vsel %vm1555_vm4, %v1549_v49, -inf  ;;  %v2837_v51 = vpop.f32.mrb[49].mxu1 }
 0x322   : > { %v1575_v53 = vmax.f32 %v1567_v25, %v1574_v50  ;;  %v1552_v54 = vpop.f32.mrb[50].mxu1 }
 0x323   : > { %v2838_v55 = vpop.f32.mrb[51].mxu1  ;;  %v957_v54 = vld [vmem:[#allocation2 + $0xd0] sm:$0xff] }
 0x324   : > { %v1577_v57 = vmax.f32 %v1573_v45, %v1575_v53  ;;  %v958_v55 = vld [vmem:[#allocation2 + $0xd8] sm:$0xff] }
 0x326   : > { %v1578_v58 = vmax.f32 %v1576_v40, %v1577_v57 }
 0x328   : > { %v1579_v59 = vsub.f32 %v3662_v44, %v1578_v58  ;;  %v1580_v61 = vsub.f32 %v3664_v48, %v1578_v58  ;;  %v1581_v62 = vsub.f32 %v3666_v52, %v1578_v58  ;;  %v1582_v63 = vsub.f32 %v3668_v56, %v1578_v58 }
 0x329   : > { %v1583_v1 = vsub.f32 %v3670_v60, %v1578_v58  ;;  %v1584_v2 = vsub.f32 %v3677_v5, %v1578_v58  ;;  %v1585_v3 = vsub.f32 %v3685_v14, %v1578_v58  ;;  %v1586_v4 = vsub.f32 %v1365_v21, %v1578_v58 }
 0x32a   : > { %v1587_v6 = vsub.f32 %v1411_v28, %v1578_v58  ;;  %v1588_v7 = vsub.f32 %v1457_v34, %v1578_v58  ;;  %v1589_v8 = vsub.f32 %v1503_v41, %v1578_v58  ;;  %v1590_v9 = vsub.f32 %v1549_v49, %v1578_v58 }
 0x32b   : > { %v1591_v10 = vmul.f32 1.442695, %v1579_v59  ;;  %v1593_v11 = vmul.f32 1.442695, %v1580_v61  ;;  %v1595_v44 = vmul.f32 1.442695, %v1581_v62  ;;  %v993_v58 = vpack.c.bf16 %v957_v54, %v957_v54 }
 0x32c   : > { %v1597_v12 = vmul.f32 1.442695, %v1582_v63  ;;  %v1599_v48 = vmul.f32 1.442695, %v1583_v1  ;;  %v1601_v52 = vmul.f32 1.442695, %v1584_v2  ;;  %v994_v59 = vpack.c.bf16 %v958_v55, %v958_v55 }
 0x32d   : > { %3114 = vpow2.f32 %v1591_v10  ;;  %v1603_v56 = vmul.f32 1.442695, %v1585_v3  ;;  %v1605_v60 = vmul.f32 1.442695, %v1586_v4  ;;  %v1607_v5 = vmul.f32 1.442695, %v1587_v6 }
 0x32e   : > { %3116 = vpow2.f32 %v1593_v11  ;;  %v1609_v15 = vmul.f32 1.442695, %v1588_v7  ;;  %v1611_v20 = vmul.f32 1.442695, %v1589_v8  ;;  %v1613_v24 = vmul.f32 1.442695, %v1590_v9 }
 0x32f   : > { %3118 = vpow2.f32 %v1595_v44  ;;  %v1806_v9 = vsel %vm1666_vm3, %v994_v59, 0  ;;  %v1760_v10 = vsel %vm1666_vm3, %v993_v58, 0 }
 0x330   : > { %3120 = vpow2.f32 %v1597_v12 }
 0x331   : > { %3122 = vpow2.f32 %v1599_v48  ;;  %v959_v48 = vld [vmem:[#allocation2 + $0xe0] sm:$0xff] }
 0x332   : > { %3124 = vpow2.f32 %v1601_v52  ;;  %v960_v52 = vld [vmem:[#allocation2 + $0xe8] sm:$0xff] }
 0x333   : > { %3126 = vpow2.f32 %v1603_v56 }
 0x334   : > { %3128 = vpow2.f32 %v1605_v60  ;;  %v995_v60 = vpack.c.bf16 %v959_v48, %v959_v48 }
 0x335   : > { %3130 = vpow2.f32 %v1607_v5  ;;  %v996_v5 = vpack.c.bf16 %v960_v52, %v960_v52 }
 0x336   : > { %3132 = vpow2.f32 %v1609_v15  ;;  %v1852_v15 = vsel %vm1666_vm3, %v995_v60, 0 }
 0x337   : > { %v3115_v13 = vpop.eup %3114  ;;  %3134 = vpow2.f32 %v1611_v20 }
 0x338   : > { %v3117_v14 = vpop.eup %3116  ;;  %v1615_v16 = vsel %vm1555_vm4, %v3115_v13, 0.0  ;;  %3136 = vpow2.f32 %v1613_v24 }
 0x339   : > { %v3119_v17 = vpop.eup %3118  ;;  %v1616_v18 = vsel %vm1555_vm4, %v3117_v14, 0.0 }
 0x33a   : > { %v3121_v19 = vpop.eup %3120  ;;  %v1617_v21 = vadd.f32 %v1616_v18, %v1615_v16  ;;  %v1618_v22 = vsel %vm1555_vm4, %v3119_v17, 0.0  ;;  %v1898_v16 = vsel %vm1666_vm3, %v996_v5, 0  ;;  %v962_v18 = vld [vmem:[#allocation2 + $0xf8] sm:$0xff] }
 0x33b   : > { %v3123_v23 = vpop.eup %3122  ;;  %v1620_v26 = vsel %vm1555_vm4, %v3121_v19, 0.0  ;;  %v998_v20 = vpack.c.bf16 %v962_v18, %v962_v18  ;;  %v3099_v18 = vld [vmem:[#allocation9 + $0x70] ss:$8 sps:$4 sm:$0xff]  }
 0x33c   : > { %v1619_v25 = vadd.f32 %v1618_v22, %v1617_v21  ;;  %v3125_v27 = vpop.eup %3124  ;;  %v1622_v29 = vsel %vm1555_vm4, %v3123_v23, 0.0 }
 0x33d   : > { %v3127_v30 = vpop.eup %3126  ;;  %v1624_v32 = vsel %vm1555_vm4, %v3125_v27, 0.0 }
 0x33e   : > { %v1621_v28 = vadd.f32 %v1620_v26, %v1619_v25  ;;  %v3129_v33 = vpop.eup %3128  ;;  %v1626_v35 = vsel %vm1555_vm4, %v3127_v30, 0.0  ;;  %v1990_v25 = vsel %vm1666_vm3, %v998_v20, 0  ;;  %v963_v26 = vld [vmem:[#allocation2 + $0x100] sm:$0xff] }
 0x33f   : > { %v3131_v36 = vpop.eup %3130  ;;  %v1628_v38 = vsel %vm1555_vm4, %v3129_v33, 0.0 }
 0x340   : > { %v1623_v31 = vadd.f32 %v1622_v29, %v1621_v28  ;;  %v3133_v39 = vpop.eup %3132  ;;  %v1630_v41 = vsel %vm1555_vm4, %v3131_v36, 0.0  ;;  %v999_v28 = vpack.c.bf16 %v963_v26, %v963_v26 }
 0x341   : > { %v3135_v42 = vpop.eup %3134  ;;  %v1632_v45 = vsel %vm1555_vm4, %v3133_v39, 0.0 }
 0x342   : > { %v1625_v34 = vadd.f32 %v1624_v32, %v1623_v31  ;;  %v3137_v46 = vpop.eup %3136  ;;  %v1634_v49 = vsel %vm1555_vm4, %v3135_v42, 0.0  ;;  %v965_v32 = vld [vmem:[#allocation2 + $0x110] sm:$0xff] }
 0x343   : > { %v1636_v51 = vsel %vm1555_vm4, %v3137_v46, 0.0 }
 0x344   : > { %v1627_v37 = vadd.f32 %v1626_v35, %v1625_v34  ;;  %v2036_v34 = vsel %vm1666_vm3, %v999_v28, 0  ;;  %v1001_v35 = vpack.c.bf16 %v965_v32, %v965_v32  ;;  %v3102_v28 = vld [vmem:[#allocation9 + $0x80] ss:$8 sps:$4 sm:$0xff]  }
 0x346   : > { %v1629_v40 = vadd.f32 %v1628_v38, %v1627_v37 }
 0x348   : > { %v1631_v43 = vadd.f32 %v1630_v41, %v1629_v40 }
 0x34a   : > { %v1633_v47 = vadd.f32 %v1632_v45, %v1631_v43  ;;  %v3078_v43 = vld [vmem:[#allocation9] ss:$8 sps:$4 sm:$0xff]   ;;  %v3080_v45 = vld [vmem:[#allocation9 + $0x4] ss:$8 sps:$4 sm:$0xff]  }
 0x34c   : > { %v1635_v50 = vadd.f32 %v1634_v49, %v1633_v47  ;;  %v3081_v47 = vld [vmem:[#allocation9 + $0x10] ss:$8 sps:$4 sm:$0xff]   ;;  %v3086_v49 = vld [vmem:[#allocation9 + $0x24] ss:$8 sps:$4 sm:$0xff]  }
 0x34e   : > { %v1637_v53 = vadd.f32 %v1636_v51, %v1635_v50 }
 0x350   : > { %3138 = vrcp.f32 %v1637_v53 }
 0x35a   : > { %v3139_v57 = vpop.eup %3138 }
 0x35b   : > { %v1639_v61 = vmul.f32 %v3139_v57, %v3115_v13  ;;  %v1640_v62 = vmul.f32 %v3139_v57, %v3117_v14  ;;  %v1641_v63 = vmul.f32 %v3139_v57, %v3119_v17  ;;  %v1642_v1 = vmul.f32 %v3139_v57, %v3121_v19  ;;  %v961_v17 = vld [vmem:[#allocation2 + $0xf0] sm:$0xff] }
 0x35c   : > { %v1643_v2 = vmul.f32 %v3139_v57, %v3123_v23  ;;  %v1644_v3 = vmul.f32 %v3139_v57, %v3125_v27  ;;  %v1645_v4 = vmul.f32 %v3139_v57, %v3127_v30  ;;  %v1646_v6 = vmul.f32 %v3139_v57, %v3129_v33  ;;  %v964_v23 = vld [vmem:[#allocation2 + $0x108] sm:$0xff]  ;;  %v966_v33 = vld [vmem:[#allocation2 + $0x118] sm:$0xff] }
 0x35d   : > { %v1651_v7 = vpack.c.bf16 %v1639_v61, %v1639_v61  ;;  %v1652_v8 = vpack.c.bf16 %v1640_v62, %v1640_v62  ;;  %v3721_v11 = vmul.f32 %v3139_v57, %v3131_v36  ;;  %v3723_v44 = vmul.f32 %v3139_v57, %v3133_v39  ;;  %v3089_v61 = vld [vmem:[#allocation9 + $0x34] ss:$8 sps:$4 sm:$0xff]   ;;  %v3087_v62 = vld [vmem:[#allocation9 + $0x30] ss:$8 sps:$4 sm:$0xff]  }
 0x35e   : > { %v3725_v12 = vmul.f32 %v3139_v57, %v3135_v42  ;;  %v3727_v56 = vmul.f32 %v3139_v57, %v3137_v46  ;;  %v1653_v13 = vpack.c.bf16 %v1641_v63, %v1641_v63  ;;  %v1654_v14 = vpack.c.bf16 %v1642_v1, %v1642_v1  ;;  %v3083_v46 = vld [vmem:[#allocation9 + $0x14] ss:$8 sps:$4 sm:$0xff]   ;;  %v3084_v57 = vld [vmem:[#allocation9 + $0x20] ss:$8 sps:$4 sm:$0xff]  }
 0x35f   : > { %2842 = vmatmul.mubr.msk.bf16.vlgmr.msra.gmra.mrb[8].mxu0 %vm1555_vm4, %v1651_v7  ;;  %2848 = vmatmul.mubr.msk.bf16.vlgmr.msra.gmra.mrb[52].mxu1 %vm1555_vm4, %v1652_v8  ;;  %v997_v19 = vpack.c.bf16 %v961_v17, %v961_v17  ;;  %v1655_v21 = vpack.c.bf16 %v1643_v2, %v1643_v2  ;;  %v1656_v22 = vpack.c.bf16 %v1644_v3, %v1644_v3  ;;  %v2128_v39 = vsel %vm1666_vm3, %v1001_v35, 0  ;;  %v3092_v2 = vld [vmem:[#allocation9 + $0x44] ss:$8 sps:$4 sm:$0xff]   ;;  %v3090_v8 = vld [vmem:[#allocation9 + $0x40] ss:$8 sps:$4 sm:$0xff]  }
 0x360   : > { %2852 = vmatpush3.bf16.msra.mxu0 %v1760_v10  ;;  %2858 = vmatpush3.bf16.msra.mxu1 %v1806_v9  ;;  %v1000_v27 = vpack.c.bf16 %v964_v23, %v964_v23  ;;  %v1657_v29 = vpack.c.bf16 %v1645_v4, %v1645_v4  ;;  %v1658_v30 = vpack.c.bf16 %v1646_v6, %v1646_v6  ;;  %v3101_v17 = vld [vmem:[#allocation9 + $0x74] ss:$8 sps:$4 sm:$0xff]  }
 0x361   : > { %2853 = vmatprep.mubr.msk.bf16.mxu0 %vm3311_vm2, %v3306_v0  ;;  %2859 = vmatprep.mubr.msk.bf16.mxu1 %vm3311_vm2, %v3306_v0  ;;  %v1944_v24 = vsel %vm1666_vm3, %v997_v19, 0  ;;  %v1002_v36 = vpack.c.bf16 %v966_v33, %v966_v33  ;;  %v1659_v37 = vpack.c.bf16 %v3721_v11, %v3721_v11  ;;  %v1660_v38 = vpack.c.bf16 %v3723_v44, %v3723_v44  ;;  %v3095_v11 = vld [vmem:[#allocation9 + $0x54] ss:$8 sps:$4 sm:$0xff]   ;;  %v3093_v44 = vld [vmem:[#allocation9 + $0x50] ss:$8 sps:$4 sm:$0xff]  }
 0x362   : > { %2863 = vmatprep.subr.bf16.mxu0 %v3306_v0  ;;  %2869 = vmatprep.subr.bf16.mxu1 %v3306_v0  ;;  %v2082_v31 = vsel %vm1666_vm3, %v1000_v27, 0  ;;  %v1661_v41 = vpack.c.bf16 %v3725_v12, %v3725_v12  ;;  %v1662_v42 = vpack.c.bf16 %v3727_v56, %v3727_v56  ;;  %v3110_v33 = vld [vmem:[#allocation9 + $0xa4] ss:$8 sps:$4 sm:$0xff]  }
 0x363   : > { %v2174_v40 = vsel %vm1666_vm3, %v1002_v36, 0 }
 0x367   : > { %2854 = vmatmul.mubr.msk.bf16.vlgmr.msra.gmra.mrb[12].mxu0 %vm1555_vm4, %v1653_v13  ;;  %2860 = vmatmul.mubr.msk.bf16.vlgmr.msra.gmra.mrb[56].mxu1 %vm1555_vm4, %v1654_v14 }
 0x368   : > { %2864 = vmatpush3.bf16.msra.mxu0 %v1852_v15  ;;  %2870 = vmatpush3.bf16.msra.mxu1 %v1898_v16  ;;  %v3096_v15 = vld [vmem:[#allocation9 + $0x60] ss:$8 sps:$4 sm:$0xff]   ;;  %v3098_v16 = vld [vmem:[#allocation9 + $0x64] ss:$8 sps:$4 sm:$0xff]  }
 0x369   : > { %2865 = vmatprep.mubr.msk.bf16.mxu0 %vm3311_vm2, %v3306_v0  ;;  %2871 = vmatprep.mubr.msk.bf16.mxu1 %vm3311_vm2, %v3306_v0 }
 0x36a   : > { %2875 = vmatprep.subr.bf16.mxu0 %v3306_v0  ;;  %2881 = vmatprep.subr.bf16.mxu1 %v3306_v0 }
 0x36f   : > { %2866 = vmatmul.mubr.msk.bf16.vlgmr.msra.gmra.mrb[16].mxu0 %vm1555_vm4, %v1655_v21  ;;  %2872 = vmatmul.mubr.msk.bf16.vlgmr.msra.gmra.mrb[60].mxu1 %vm1555_vm4, %v1656_v22  ;;  %v3104_v21 = vld [vmem:[#allocation9 + $0x84] ss:$8 sps:$4 sm:$0xff]  }
 0x370   : > { %2876 = vmatpush3.bf16.msra.mxu0 %v1944_v24  ;;  %2882 = vmatpush3.bf16.msra.mxu1 %v1990_v25 }
 0x371   : > { %2877 = vmatprep.mubr.msk.bf16.mxu0 %vm3311_vm2, %v3306_v0  ;;  %2883 = vmatprep.mubr.msk.bf16.mxu1 %vm3311_vm2, %v3306_v0 }
 0x372   : > { %2887 = vmatprep.subr.bf16.mxu0 %v3306_v0  ;;  %2893 = vmatprep.subr.bf16.mxu1 %v3306_v0 }
 0x377   : > { %2878 = vmatmul.mubr.msk.bf16.vlgmr.msra.gmra.mrb[20].mxu0 %vm1555_vm4, %v1657_v29  ;;  %2884 = vmatmul.mubr.msk.bf16.vlgmr.msra.gmra.mrb[64].mxu1 %vm1555_vm4, %v1658_v30  ;;  %v3107_v29 = vld [vmem:[#allocation9 + $0x94] ss:$8 sps:$4 sm:$0xff]   ;;  %v3105_v30 = vld [vmem:[#allocation9 + $0x90] ss:$8 sps:$4 sm:$0xff]  }
 0x378   : > { %2888 = vmatpush3.bf16.msra.mxu0 %v2036_v34  ;;  %2894 = vmatpush3.bf16.msra.mxu1 %v2082_v31 }
 0x379   : > { %2889 = vmatprep.mubr.msk.bf16.mxu0 %vm3311_vm2, %v3306_v0  ;;  %2895 = vmatprep.mubr.msk.bf16.mxu1 %vm3311_vm2, %v3306_v0 }
 0x37a   : > { %2899 = vmatprep.subr.bf16.mxu0 %v3306_v0  ;;  %2905 = vmatprep.subr.bf16.mxu1 %v3306_v0 }
 0x37f   : > { %2890 = vmatmul.mubr.msk.bf16.vlgmr.msra.gmra.mrb[24].mxu0 %vm1555_vm4, %v1659_v37  ;;  %2896 = vmatmul.mubr.msk.bf16.vlgmr.msra.gmra.mrb[68].mxu1 %vm1555_vm4, %v1660_v38 }
 0x380   : > { %2900 = vmatpush3.bf16.msra.mxu0 %v2128_v39  ;;  %2906 = vmatpush3.bf16.msra.mxu1 %v2174_v40  ;;  %v3108_v40 = vld [vmem:[#allocation9 + $0xa0] ss:$8 sps:$4 sm:$0xff]  }
 0x381   : > { %2901 = vmatprep.mubr.msk.bf16.mxu0 %vm3311_vm2, %v3306_v0  ;;  %2907 = vmatprep.mubr.msk.bf16.mxu1 %vm3311_vm2, %v3306_v0 }
 0x382   : > { %2438 = vmatprep.subr.bf16.mxu0 %v3080_v45 }
 0x387   : > { %2902 = vmatmul.mubr.msk.bf16.vlgmr.msra.gmra.mrb[28].mxu0 %vm1555_vm4, %v1661_v41  ;;  %2908 = vmatmul.mubr.msk.bf16.vlgmr.msra.gmra.mrb[72].mxu1 %vm1555_vm4, %v1662_v42  ;;  %v3113_v41 = vld [vmem:[#allocation9 + $0xb4] ss:$8 sps:$4 sm:$0xff]   ;;  %v3111_v42 = vld [vmem:[#allocation9 + $0xb0] ss:$8 sps:$4 sm:$0xff]  }
 0x388   : > { %2439 = vmatpush1.bf16.msra.mxu0 %v3078_v43 }
 0x389   : > { %2440 = vmatprep.subr.bf16.mxu0 %v3083_v46 }
 0x38c   : > { %2441 = vmatpush1.bf16.msra.mxu0 %v3081_v47 }
 0x38d   : > { %2442 = vmatprep.subr.bf16.mxu0 %v3086_v49 }
 0x390   : > { %2443 = vmatpush1.bf16.msra.mxu0 %v3084_v57 }
 0x391   : > { %2444 = vmatprep.subr.bf16.mxu0 %v3089_v61 }
 0x394   : > { %2445 = vmatpush1.bf16.msra.mxu0 %v3087_v62 }
 0x395   : > { %2446 = vmatprep.subr.bf16.mxu0 %v3092_v2 }
 0x398   : > { %2447 = vmatpush1.bf16.msra.mxu0 %v3090_v8 }
 0x399   : > { %2448 = vmatprep.subr.bf16.mxu0 %v3095_v11 }
 0x39c   : > { %2449 = vmatpush1.bf16.msra.mxu0 %v3093_v44 }
 0x39d   : > { %2450 = vmatprep.subr.bf16.mxu0 %v3098_v16 }
 0x3a0   : > { %2451 = vmatpush1.bf16.msra.mxu0 %v3096_v15 }
 0x3a1   : > { %2452 = vmatprep.subr.bf16.mxu0 %v3101_v17 }
 0x3a4   : > { %2453 = vmatpush1.bf16.msra.mxu0 %v3099_v18 }
 0x3a5   : > { %2454 = vmatprep.subr.bf16.mxu0 %v3104_v21 }
 0x3a8   : > { %2455 = vmatpush1.bf16.msra.mxu0 %v3102_v28 }
 0x3a9   : > { %2456 = vmatprep.subr.bf16.mxu0 %v3107_v29 }
 0x3ac   : > { %2457 = vmatpush1.bf16.msra.mxu0 %v3105_v30 }
 0x3ad   : > { %2458 = vmatprep.subr.bf16.mxu0 %v3110_v33 }
 0x3b0   : > { %2459 = vmatpush1.bf16.msra.mxu0 %v3108_v40 }
 0x3b1   : > { %2460 = vmatprep.subr.bf16.mxu0 %v3113_v41 }
 0x3b4   : > { %2461 = vmatpush1.bf16.msra.mxu0 %v3111_v42 }
 0x432   : > { %v1704_v50 = vpop.f32.mrb[8].mxu0  ;;  %v1750_v0 = vpop.f32.mrb[52].mxu1 }
 0x433   : > { %2216 = vst.msk [vmem:[#allocation3] sm:$0xff] %vm761_vm1, %v1704_v50  ;;  %v2849_v51 = vpop.f32.mrb[53].mxu1  ;;  %2218 = vrot.lane.b32.xlu1 %v1750_v0, %s3312_s25  ;;  %v2843_v53 = vpop.f32.mrb[9].mxu0 }
 0x434   : > { %v1707_v54 = vpop.f32.mrb[10].mxu0  ;;  %v1753_v55 = vpop.f32.mrb[54].mxu1 }
 0x435   : > { %v2844_v58 = vpop.f32.mrb[11].mxu0  ;;  %v2850_v59 = vpop.f32.mrb[55].mxu1 }
 0x43a   : > { %v1796_v63 = vpop.f32.mrb[12].mxu0  ;;  %v1842_v1 = vpop.f32.mrb[56].mxu1 }
 0x43b   : > { %v2861_v3 = vpop.f32.mrb[57].mxu1  ;;  %2230 = vrot.lane.b32.xlu1 %v1842_v1, %s3310_s6  ;;  %2224 = vrot.lane.b32.xlu0 %v1796_v63, %s3309_s30  ;;  %v2855_v4 = vpop.f32.mrb[13].mxu0 }
 0x43c   : > { %v1799_v6 = vpop.f32.mrb[14].mxu0  ;;  %v1845_v7 = vpop.f32.mrb[58].mxu1 }
 0x43d   : > { %v2856_v9 = vpop.f32.mrb[15].mxu0  ;;  %v2862_v10 = vpop.f32.mrb[59].mxu1  ;;  %v2305_v7 = vlaneseq }
 0x43e   : > { %v2303_v10 = vld [vmem:[%s3858_s3] sm:$0x3] }
 0x43f   : > { %v2306_v8 = vshrl.u32 %v2305_v7, 7 }
 0x441   : > { %v2307_v9 = vsub.s32 0, %v2306_v8  ;;  %v2311_v11 = vsub.s32 1, %v2306_v8 }
 0x442   : > { %v1888_v12 = vpop.f32.mrb[16].mxu0  ;;  %v1934_v48 = vpop.f32.mrb[60].mxu1 }
 0x443   : > { %v2873_v52 = vpop.f32.mrb[61].mxu1  ;;  %2236 = vrot.lane.b32.xlu0 %v1888_v12, %s3308_s23  ;;  %v2867_v56 = vpop.f32.mrb[17].mxu0  ;;  %v2308_v44 = vrot.slane %v2303_v10, %v2307_v9  ;;  %v2312_v12 = vrot.slane %v2303_v10, %v2311_v11  ;;  %s3315_s23 = smov [#allocation10]  }
 0x444   : > { %v1891_v60 = vpop.f32.mrb[18].mxu0  ;;  %v1937_v5 = vpop.f32.mrb[62].mxu1 }
 0x445   : > { %v2868_v13 = vpop.f32.mrb[19].mxu0  ;;  %v2874_v14 = vpop.f32.mrb[63].mxu1 }
 0x447   : > { %2242 = vrot.lane.b32.xlu0 %v1934_v48, %s3314_s12 }
 0x44a   : > { %v1980_v19 = vpop.f32.mrb[20].mxu0  ;;  %v2026_v20 = vpop.f32.mrb[64].mxu1 }
 0x44b   : > { %v2885_v22 = vpop.f32.mrb[65].mxu1  ;;  %2248 = vrot.lane.b32.xlu0 %v1980_v19, %s3313_s7  ;;  %v2879_v23 = vpop.f32.mrb[21].mxu0 }
 0x44c   : > { %v1983_v24 = vpop.f32.mrb[22].mxu0  ;;  %v2029_v25 = vpop.f32.mrb[66].mxu1 }
 0x44d   : > { %v2880_v26 = vpop.f32.mrb[23].mxu0  ;;  %v2886_v27 = vpop.f32.mrb[67].mxu1 }
 0x44f   : > { %2254 = vrot.lane.b32.xlu0 %v2026_v20, %s3307_s21  ;;  %s3226_s21 = scalar_lea.vmem %s3812_s29, 256 }
 0x450   : > { %p3227_p11 = scmp.ne.s32.totalorder %s3812_s29, %s3226_s21 }
 0x452   : > { %v2072_v31 = vpop.f32.mrb[24].mxu0  ;;  %v2118_v32 = vpop.f32.mrb[68].mxu1  ;;  %p3228_p1 = pnand %p3227_p11, %p3873_p0 }
 0x453   : > { %2259 = vst.msk [vmem:[#allocation3 + $0x8] sm:$0xff] %vm761_vm1, %v2072_v31  ;;  %2261 = vrot.lane.b32.xlu1 %v2118_v32, %s3312_s25  ;;  %v2891_v34 = vpop.f32.mrb[25].mxu0  ;;  %v2897_v35 = vpop.f32.mrb[69].mxu1 }
 0x454   : > { %v2075_v36 = vpop.f32.mrb[26].mxu0  ;;  %v2121_v37 = vpop.f32.mrb[70].mxu1  ;;  %p3229_p3 = pneg %p3228_p1 }
 0x455   : > { %v2892_v38 = vpop.f32.mrb[27].mxu0  ;;  %v2898_v39 = vpop.f32.mrb[71].mxu1 }
 0x45a   : > { %v2164_v43 = vpop.f32.mrb[28].mxu0  ;;  %v2210_v45 = vpop.f32.mrb[72].mxu1 }
 0x45b   : > { %v2909_v46 = vpop.f32.mrb[73].mxu1  ;;  %2266 = vrot.lane.b32.xlu1 %v2164_v43, %s3309_s30  ;;  %v2903_v47 = vpop.f32.mrb[29].mxu0  ;;  %s3230_s30 = sshll.u32 %s3315_s23, 4  ;;  %s3231_s30 = int_to_ptr.vmem [resolvable:$false] %s3230_s30 }
 0x45c   : > { %v2167_v49 = vpop.f32.mrb[30].mxu0  ;;  %v2213_v50 = vpop.f32.mrb[74].mxu1  ;;  %p3233_p5 = scmp.lt.s32.totalorder %s3812_s29, %s3231_s30 }
 0x45d   : > { %v2904_v0 = vpop.f32.mrb[31].mxu0  ;;  %v2910_v51 = vpop.f32.mrb[75].mxu1 }
 0x45f   : > { %2271 = vrot.lane.b32.xlu1 %v2210_v45, %s3310_s6  ;;  %s3232_s6 = scalar_lea.vmem %s3231_s30, 512 }
 0x460   : > { %p3234_p9 = scmp.lt.s32.totalorder %s3232_s6, %s3226_s21 }
 0x462   : > { %p3235_p12 = por %p3234_p9, %p3233_p5 }
 0x464   : > { %p3236_p2 = pnand %p3235_p12, %p3229_p3 }
 0x4a5   : > { %v2219_v53 = vpop.permute.xlu1 %2218 }
 0x4a6   : > { %2222 = vst.msk [vmem:[#allocation3] sm:$0xff] %vm2221_vm5, %v2219_v53 }
 0x4ad   : > { %v2231_v54 = vpop.permute.xlu1 %2230  ;;  %v2225_v55 = vpop.permute.xlu0 %2224 }
 0x4ae   : > { %2228 = vst.msk [vmem:[#allocation3] sm:$0xff] %vm2227_vm6, %v2225_v55 }
 0x4af   : > { %2234 = vst.msk [vmem:[#allocation3] sm:$0xff] %vm2233_vm7, %v2231_v54 }
 0x4b5   : > { %v2237_v57 = vpop.permute.xlu0 %2236 }
 0x4b6   : > { %2240 = vst.msk [vmem:[#allocation3] sm:$0xff] %vm2239_vm8, %v2237_v57 }
 0x4b9   : > { %v2243_v58 = vpop.permute.xlu0 %2242 }
 0x4ba   : > { %2246 = vst.msk [vmem:[#allocation3] sm:$0xff] %vm2245_vm9, %v2243_v58 }
 0x4bd   : > { %v2249_v59 = vpop.permute.xlu0 %2248 }
 0x4be   : > { %2252 = vst.msk [vmem:[#allocation3] sm:$0xff] %vm2251_vm10, %v2249_v59 }
 0x4c1   : > { %v2255_v61 = vpop.permute.xlu0 %2254 }
 0x4c2   : > { %2258 = vst.msk [vmem:[#allocation3] sm:$0xff] %vm2257_vm11, %v2255_v61 }
 0x4c5   : > { %v2262_v62 = vpop.permute.xlu1 %2261 }
 0x4c6   : > { %2264 = vst.msk [vmem:[#allocation3 + $0x8] sm:$0xff] %vm2221_vm5, %v2262_v62 }
 0x4c9   : > { %v2275_v2 = vld [vmem:[#allocation3] sm:$0xff] }
 0x4ca   : > { %v2277_v6 = vpack.c.bf16 %v2275_v2, %v2275_v2 }
 0x4cd   : > { %v2267_v63 = vpop.permute.xlu1 %2266 }
 0x4ce   : > { %2269 = vst.msk [vmem:[#allocation3 + $0x8] sm:$0xff] %vm2227_vm6, %v2267_v63 }
 0x4d1   : > { %v2272_v1 = vpop.permute.xlu1 %2271 }
 0x4d2   : > { %2274 = vst.msk [vmem:[#allocation3 + $0x8] sm:$0xff] %vm2233_vm7, %v2272_v1 }
 0x4d9   : > { %v2276_v3 = vld [vmem:[#allocation3 + $0x8] sm:$0xff] }
 0x4da   : > { %v2278_v4 = vpack.c.bf16 %v2276_v3, %v2276_v3 }
 0x4dc   : > { %2711 = vmatprep.mubr.msk.bf16.mxu0 %vm635_vm0, %v2278_v4 }
 0x4dd   : > { %2471 = vmatmul.mubr.bf16.vlgmr.msra.gmra.mrb[32].mxu0 %v2277_v6 }
 0x5b0   : > { %v2472_v48 = vpop.f32.mrb[32].mxu0 }
 0x5b1   : > { %v2473_v52 = vadd.f32 %v2472_v48, %v2308_v44  ;;  %v2474_v56 = vpop.f32.mrb[33].mxu0 }
 0x5b2   : > { %v2475_v60 = vadd.f32 %v2474_v56, %v2312_v12  ;;  %v2476_v5 = vpop.f32.mrb[34].mxu0 }
 0x5b3   : > { %2479 = vst [vmem:[%s242_s27] sm:$0xff] %v2473_v52  ;;  %v2477_v13 = vpop.f32.mrb[35].mxu0 }
 0x5b4   : > { %2480 = vst.msk [vmem:[%s242_s27 + $0x8] sm:$0xff] %vm635_vm0, %v2475_v60 }
 0x5b5   : > { %3239 = shalt.err (!%p3236_p2)
}
 0x5b6   : > { %s3240_s5 = scalar_lea.hbm %s3810_s10, 256  ;;  %s3244_s12 = scalar_lea.hbm %s3859_s4, 512 }
 0x5b7   : > { %p3241_p13 = scmp.ne.s32.totalorder %s3810_s10, %s3240_s5  ;;  %p3245_p4 = scmp.lt.u32.totalorder %s3810_s10, %s3859_s4 }
 0x5b8   : > { %p3246_p7 = scmp.lt.u32.totalorder %s3244_s12, %s3240_s5  ;;  %p3248_p11 = scmp.lt.u32.totalorder %s3240_s5, %s3810_s10 }
 0x5b9   : > { %p3242_p6 = pnand %p3241_p13, %p3873_p0 }
 0x5ba   : > { %p3247_p8 = por %p3246_p7, %p3245_p4 }
 0x5bb   : > { %p3243_p10 = pneg %p3242_p6 }
 0x5bc   : > { %p3249_p1 = por %p3248_p11, %p3247_p8 }
 0x5be   : > { %p3250_p3 = pnand %p3249_p1, %p3243_p10 }
 0x5c0   : > { %3253 = shalt.err (!%p3250_p3)
}
 0x5c1   : > { %2921 = dma.vmem_to_hbm [thread:$0]  (%p3873_p0), %s3812_s29, 256, %s3810_s10, %s2482_s19  }
 0x5c2 PF: > { %s2508_s26 = sand.u32 1, %s3284_s15   ;;  %p3874_p5 = scmp.ne.s32.totalorder %s3864_s22, 0 }
 0x5c3   : > { %p3875_p9 = scmp.ge.s32.totalorder %s3296_s18, 2  ;;  %s2509_s28 = scalar_lea.sflag [#allocation6], %s2508_s26 }
 0x5c5   : > { %p2935_p12 = pnand %p3875_p9, %p3874_p5 }
 0x5c7   : > { %3279 = dma.done.wait (!%p2935_p12), %s2509_s28, 256  }
 0x5c8   : > { %3281 = vsyncadd (!%p2935_p12), %s2509_s28, 4294967040  ;;  %p18_p2 = scmp.ge.s32.totalorder %s3451_s11, 4   ;;  %s3876_s15 = smov %s3288_s16 }
 0x5c9   : > { %s3877_s16 = smov %s3292_s17  ;;  %s3878_s17 = smov %s3460_s14 }
 0x5ca   : > { %s3879_s18 = smov %s3451_s11  ;;  %20 = sbr.rel (!%p18_p2) target bundleno = 6 (0x6), region = 124 }
 0x5d1   :  { %2514 = vsyncpa [#allocation5], 1 }
 0x5d2   :  { %2516 = vsyncpa [#allocation5 + $0x1], 1 }
 0x5d3   :  { %2517 = vsyncpa [#allocation8], 1 }
 0x5d4   :  { %2518 = vsyncpa [#allocation6], 1 }
 0x5d5   :  { %2520 = vsyncpa [#allocation6 + $0x1], 1 }

</bundles_post_ra>
